<compile_context>
chip_gen: v6e
topology: v6e:2x2x1
jax: 0.10.0
libtpu: 0.0.40
codegen_flags: <defaults>
</compile_context>

<pallas_src>
import jax
import jax.numpy as jnp
from jax import lax
from jax.experimental import pallas as pl
from jax.experimental.pallas import tpu as pltpu

GRID = 24                     # 24x24 patch grid (as in create_mask(24, 24, ...))
T = GRID * GRID               # 576 patch tokens
D = 128                       # patch_proj feature dim
C_REAL = 35                   # number of object classes
C = 128                       # class axis padded to lane width

NEW_ORDER = [0, 33, 20, 32, 1, 2, 3, 4, 30, 5, 6, 7, 28, 21, 27, 8, 25, 9, 34, 10,
             31, 24, 11, 29, 12, 23, 13, 22, 14, 15, 16, 17, 26, 18, 19]
GROUP_A = [1, 3, 8, 12, 14, 23]                                   # 0.6 / 0.4 blend
GROUP_B = [0, 2, 4, 5, 6, 7, 9, 10, 11, 13, 15, 16, 17, 18, 19, 20, 21, 22, 23, 24,
           25, 26, 27, 28, 29, 30, 32, 33, 34]                    # 0.3 / 0.7 blend


# ---------------------------------------------------------------------------
# Pallas kernel: one grid step = G frames.
#   build masks from grid-space boxes (VPU)        -> (G, N, T)
#   masks @ patches per frame (MXU, bf16 in / f32 acc) -> pooled (G, N, D)
#   L2 normalize (VPU + EUP rsqrt)                 -> feat
#   single merged classifier matmul (G*N, D)@(D, C) with alpha-folded weights (MXU)
#   score = sim + beta * det                        (VPU)
# ---------------------------------------------------------------------------
def obj_feat_kernel(patch_ref, box_ref, det_ref, coord_ref, w_ref, bb_ref,
                    feat_ref, score_ref):
    patches = patch_ref[...]                                  # (G, T, D) bf16
    boxes = box_ref[...]                                      # (G, N, 4) f32, grid units

    # Binary patch mask per box from cell-overlap test (cell c covers [c, c+1)).
    # TODO(synk): exact create_mask() semantics unknown; cell-overlap binary mask used.
    col = coord_ref[0:1, :].reshape(1, 1, T)                  # (1, 1, T) token column
    row = coord_ref[1:2, :].reshape(1, 1, T)                  # (1, 1, T) token row
    x1 = boxes[..., 0:1]; y1 = boxes[..., 1:2]                # (G, N, 1)
    x2 = boxes[..., 2:3]; y2 = boxes[..., 3:4]
    inside = ((col + 1.0 > x1) & (col < x2) &
              (row + 1.0 > y1) & (row < y2))                  # (G, N, T) bool
    masks = inside.astype(jnp.bfloat16)                       # exact 0/1 in bf16

    # xx3_weighted.sum(dim=1)  ==  masks @ patches  (per frame; G MXU calls).
    pooled = jnp.einsum('gnt,gtd->gnd', masks, patches,
                        preferred_element_type=jnp.float32)   # (G, N, D) f32

    # The 1/weights_sum scale from the original code cancels exactly under the
    # following L2 normalization, so it is skipped entirely.  rsqrt -> EUP; the
    # clamp gives a zero feature (not NaN) for empty / fully-clipped boxes.
    sumsq = jnp.sum(pooled * pooled, axis=-1, keepdims=True)
    feat = pooled * lax.rsqrt(jnp.maximum(sumsq, 1e-24))      # (G, N, D)
    feat_ref[...] = feat

    # modelB linear classifier, merged across all G*N boxes in one MXU matmul.
    # W columns are pre-permuted by new_order and pre-scaled by alpha on host:
    #   score = alpha*similarity + beta*det  ==  feat @ W' + b' + beta*det
    g, n, d = feat.shape
    feat2d = feat.reshape(g * n, d).astype(jnp.bfloat16)      # (G*N, D)
    sim = jnp.dot(feat2d, w_ref[...],
                  preferred_element_type=jnp.float32)         # (G*N, C)
    sim = sim.reshape(g, n, C) + bb_ref[0:1, :]               # + alpha-scaled bias
    score_ref[...] = sim + bb_ref[1:2, :] * det_ref[...]      # + beta * detector score


def object_features_and_scores(patch_proj, grid_boxes, det_scores, coords,
                               w_alpha, bb, *, frames_per_step=4):
    """patch_proj: (F,T,D) bf16, grid_boxes: (F,N,4) f32 (clamped, 24-grid units),
    det_scores: (F,N,C) f32, coords: (2,T) f32 [col;row] per token,
    w_alpha: (D,C) bf16 (columns permuted by new_order, scaled by alpha),
    bb: (2,C) f32 rows = [alpha*bias(new_order), beta]."""
    f, n = grid_boxes.shape[0], grid_boxes.shape[1]
    g = frames_per_step
    assert f % g == 0, "frame count must be a multiple of frames_per_step"
    steps = f // g

    # Advisory cost hint so XLA can overlap this small call with neighboring ops.
    flops = 2 * f * n * T * D + 2 * f * n * D * C
    bytes_accessed = (f * (T * D * 2 + n * 4 * 4 + n * C * 4       # patches, boxes, det
                           + n * D * 4 + n * C * 4)                # feat, score outputs
                      + D * C * 2 + 2 * C * 4 + 2 * T * 4)         # constants
    cost = pl.CostEstimate(flops=flops, transcendentals=f * n,
                           bytes_accessed=bytes_accessed)

    feat, score = pl.pallas_call(
        obj_feat_kernel,
        grid=(steps,),
        in_specs=[
            pl.BlockSpec((g, T, D), lambda i: (i, 0, 0)),   # G frames of patch tokens
            pl.BlockSpec((g, n, 4), lambda i: (i, 0, 0)),   # grid-space box coords
            pl.BlockSpec((g, n, C), lambda i: (i, 0, 0)),   # detector scores
            pl.BlockSpec((2, T), lambda i: (0, 0)),         # token col/row table (const)
            pl.BlockSpec((D, C), lambda i: (0, 0)),         # classifier weights (const)
            pl.BlockSpec((2, C), lambda i: (0, 0)),         # packed [bias'; beta] (const)
        ],
        out_specs=[
            pl.BlockSpec((g, n, D), lambda i: (i, 0, 0)),
            pl.BlockSpec((g, n, C), lambda i: (i, 0, 0)),
        ],
        out_shape=[
            jax.ShapeDtypeStruct((f, n, D), jnp.float32),
            jax.ShapeDtypeStruct((f, n, C), jnp.float32),
        ],
        compiler_params=pltpu.CompilerParams(dimension_semantics=("parallel",)),
        cost_estimate=cost,
    )(patch_proj, grid_boxes, det_scores, coords, w_alpha, bb)
    return feat, score[:, :, :C_REAL]


# ---------------------------------------------------------------------------
# Host-side glue (box clamp / rescale, token coords, blend-coefficient setup)
# ---------------------------------------------------------------------------
def make_grid_boxes(boxes_xyxy, img_w, img_h):
    """Clamp boxes to the image (same one-sided clamps as the original code) and
    rescale to the 24x24 grid.  boxes_xyxy: (F, N, 4) -> (F, N, 4) f32."""
    x1 = jnp.clip(boxes_xyxy[..., 0], 0.0, None) / img_w * GRID
    y1 = jnp.clip(boxes_xyxy[..., 1], 0.0, None) / img_h * GRID
    x2 = jnp.clip(boxes_xyxy[..., 2], None, img_w) / img_w * GRID
    y2 = jnp.clip(boxes_xyxy[..., 3], None, img_h) / img_h * GRID
    return jnp.stack([x1, y1, x2, y2], axis=-1).astype(jnp.float32)


def make_token_coords():
    """(2, T) f32 table: row 0 = column index of each flattened token, row 1 = row index."""
    t = jnp.arange(T, dtype=jnp.float32)
    return jnp.stack([t % GRID, jnp.floor(t / GRID)], axis=0)


def make_blend_coeffs():
    """Reproduce the sequential score-blending loops exactly (note: class 23 is in
    both lists -> effective alpha=0.72/beta=0.28; class 31 is untouched)."""
    alpha = [0.0] * C_REAL
    beta = [1.0] * C_REAL
    for nb in GROUP_A:
        alpha[nb], beta[nb] = 0.6, 0.4
    for nb in GROUP_B:
        alpha[nb] = 0.3 + 0.7 * alpha[nb]
        beta[nb] = 0.7 * beta[nb]
    return jnp.array(alpha, jnp.float32), jnp.array(beta, jnp.float32)


# ---------------------------------------------------------------------------
# Pure-JAX reference mirroring the original (per-box) math, for validation.
# ---------------------------------------------------------------------------
def _make_masks_ref(grid_boxes):
    coords = jnp.arange(GRID, dtype=jnp.float32)
    x1, y1, x2, y2 = (grid_boxes[..., k] for k in range(4))
    col_in = (coords + 1.0 > x1[..., None]) & (coords < x2[..., None])    # (F, N, 24)
    row_in = (coords + 1.0 > y1[..., None]) & (coords < y2[..., None])    # (F, N, 24)
    mask = (row_in[..., :, None] & col_in[..., None, :]).astype(jnp.float32)
    return mask.reshape(mask.shape[0], mask.shape[1], T)                  # flatten()


def reference(patch_proj, grid_boxes, det_scores, w_alpha, bb):
    p = patch_proj.astype(jnp.float32)                    # (F, T, D)
    m = _make_masks_ref(grid_boxes)                       # (F, N, T)
    pooled = jnp.einsum('fnt,ftd->fnd', m, p)
    wsum = jnp.maximum(m.sum(-1, keepdims=True), 1e-9)    # original weights_sum path
    feat = pooled / wsum
    feat = feat / jnp.maximum(jnp.linalg.norm(feat, axis=-1, keepdims=True), 1e-12)
    feat_bf = feat.astype(jnp.bfloat16).astype(jnp.float32)
    sim = jnp.einsum('fnd,dc->fnc', feat_bf, w_alpha.astype(jnp.float32)) + bb[0]
    score = sim + bb[1] * det_scores
    return feat, score[..., :C_REAL]


if __name__ == "__main__":
    key = jax.random.PRNGKey(0)
    k_patch, k_w, k_b, k_box1, k_box2, k_det = jax.random.split(key, 6)

    F = 8             # frames in the clip
    G = 4             # frames per grid step -> grid=(2,), so both v7x TCs get work
    N_BOXES = 8       # detections kept per frame (padded; sublane multiple)
    IMG_W, IMG_H = 640.0, 480.0

    # Frame patch features (input['patch_proj'] per frame), bf16 on the wire.
    patch_proj = jax.random.normal(k_patch, (F, T, D), jnp.float32).astype(jnp.bfloat16)

    # modelB linear classifier weights (D -> 35), deterministic init.
    w_full = jax.random.normal(k_w, (D, C_REAL), jnp.float32) * 0.05
    b_full = jax.random.normal(k_b, (C_REAL,), jnp.float32) * 0.01

    # Fold index_select(new_order) AND the per-class alpha into the weight columns;
    # pad the class axis to 128 lanes (padding classes carry alpha=beta=0 -> score 0).
    order = jnp.array(NEW_ORDER, jnp.int32)
    alpha_r, beta_r = make_blend_coeffs()                                   # (35,), (35,)
    w_alpha = jnp.zeros((D, C), jnp.float32).at[:, :C_REAL].set(
        w_full[:, order] * alpha_r[None, :]).astype(jnp.bfloat16)           # (D, C) bf16
    b_alpha = jnp.zeros((C,), jnp.float32).at[:C_REAL].set(b_full[order] * alpha_r)
    beta_pad = jnp.zeros((C,), jnp.float32).at[:C_REAL].set(beta_r)
    bb = jnp.stack([b_alpha, beta_pad], axis=0)                             # (2, C)

    # Detected boxes (xyxy, some deliberately out of bounds) and detector scores.
    cxcy = jax.random.uniform(k_box1, (F, N_BOXES, 2), minval=50.0, maxval=500.0)
    wh = jax.random.uniform(k_box2, (F, N_BOXES, 2), minval=40.0, maxval=300.0)
    boxes = jnp.concatenate([cxcy - wh / 2.0, cxcy + wh / 2.0], axis=-1)    # (F, N, 4)
    det = jax.random.uniform(k_det, (F, N_BOXES, C_REAL), minval=0.0, maxval=1.0)
    det_scores = jnp.zeros((F, N_BOXES, C), jnp.float32).at[..., :C_REAL].set(det)

    grid_boxes = make_grid_boxes(boxes, IMG_W, IMG_H)                       # (F, N, 4)
    coords = make_token_coords()                                            # (2, T)

    feat, scores = object_features_and_scores(
        patch_proj, grid_boxes, det_scores, coords, w_alpha, bb, frames_per_step=G)
    jax.block_until_ready((feat, scores))

    ref_feat, ref_scores = reference(patch_proj, grid_boxes, det_scores, w_alpha, bb)
    assert jnp.allclose(feat, ref_feat, atol=1e-3, rtol=1e-3)
    assert jnp.allclose(scores, ref_scores, atol=1e-3, rtol=1e-3)

    # TODO(synk): modelA (DETR detector), criterionA, postprocessorA, DeepSORT `run`,
    # AFLink linking, trajectory formatting/IoU matching and modelC (relation head)
    # are external modules / host-side data-dependent control flow — not kernelized.
    print("KERNEL_OK")
</pallas_src>

<mosaic_0001>
module attributes {stable_mosaic.version = 11 : i64} {
  func.func @obj_feat_kernel(%arg0: i32, %arg1: memref<4x576x128xbf16, #tpu.memory_space<vmem>>, %arg2: memref<4x8x4xf32, #tpu.memory_space<vmem>>, %arg3: memref<4x8x128xf32, #tpu.memory_space<vmem>>, %arg4: memref<2x576xf32, #tpu.memory_space<vmem>>, %arg5: memref<128x128xbf16, #tpu.memory_space<vmem>>, %arg6: memref<2x128xf32, #tpu.memory_space<vmem>>, %arg7: memref<4x8x128xf32, #tpu.memory_space<vmem>>, %arg8: memref<4x8x128xf32, #tpu.memory_space<vmem>>) attributes {dimension_semantics = [#tpu.dimension_semantics<parallel>], iteration_bounds = array<i64: 2>, scalar_prefetch = 0 : i64, scratch_operands = 0 : i64, tpu.core_type = #tpu.core_type<tc>, window_params = [{transform_indices = @transform_0, window_bounds = array<i64: 4, 576, 128>}, {transform_indices = @transform_1, window_bounds = array<i64: 4, 8, 4>}, {transform_indices = @transform_2, window_bounds = array<i64: 4, 8, 128>}, {pipeline_mode = #tpu.pipeline_mode<synchronous>, transform_indices = @transform_3, window_bounds = array<i64: 2, 576>}, {pipeline_mode = #tpu.pipeline_mode<synchronous>, transform_indices = @transform_4, window_bounds = array<i64: 128, 128>}, {pipeline_mode = #tpu.pipeline_mode<synchronous>, transform_indices = @transform_5, window_bounds = array<i64: 2, 128>}, {transform_indices = @transform_6, window_bounds = array<i64: 4, 8, 128>}, {transform_indices = @transform_7, window_bounds = array<i64: 4, 8, 128>}]} {
    %c0 = arith.constant 0 : index
    %c0_0 = arith.constant 0 : index
    %c0_1 = arith.constant 0 : index
    %0 = vector.load %arg1[%c0, %c0_0, %c0_1] : memref<4x576x128xbf16, #tpu.memory_space<vmem>>, vector<4x576x128xbf16>
    %c0_2 = arith.constant 0 : index
    %c0_3 = arith.constant 0 : index
    %c0_4 = arith.constant 0 : index
    %1 = vector.load %arg2[%c0_2, %c0_3, %c0_4] : memref<4x8x4xf32, #tpu.memory_space<vmem>>, vector<4x8x4xf32>
    %c0_5 = arith.constant 0 : index
    %c0_6 = arith.constant 0 : index
    %2 = vector.load %arg4[%c0_5, %c0_6] : memref<2x576xf32, #tpu.memory_space<vmem>>, vector<1x576xf32>
    %3 = vector.shape_cast %2 : vector<1x576xf32> to vector<1x1x576xf32>
    %c1 = arith.constant 1 : index
    %c0_7 = arith.constant 0 : index
    %4 = vector.load %arg4[%c1, %c0_7] : memref<2x576xf32, #tpu.memory_space<vmem>>, vector<1x576xf32>
    %5 = vector.shape_cast %4 : vector<1x576xf32> to vector<1x1x576xf32>
    %6 = vector.extract_strided_slice %1 {offsets = [0, 0, 0], sizes = [4, 8, 1], strides = [1, 1, 1]} : vector<4x8x4xf32> to vector<4x8x1xf32>
    %7 = vector.extract_strided_slice %1 {offsets = [0, 0, 1], sizes = [4, 8, 1], strides = [1, 1, 1]} : vector<4x8x4xf32> to vector<4x8x1xf32>
    %8 = vector.extract_strided_slice %1 {offsets = [0, 0, 2], sizes = [4, 8, 1], strides = [1, 1, 1]} : vector<4x8x4xf32> to vector<4x8x1xf32>
    %9 = vector.extract_strided_slice %1 {offsets = [0, 0, 3], sizes = [4, 8, 1], strides = [1, 1, 1]} : vector<4x8x4xf32> to vector<4x8x1xf32>
    %cst = arith.constant 1.000000e+00 : f32
    %10 = vector.broadcast %cst : f32 to vector<1x1x576xf32>
    %11 = arith.addf %3, %10 : vector<1x1x576xf32>
    %12 = vector.broadcast %11 : vector<1x1x576xf32> to vector<4x8x576xf32>
    %13 = vector.broadcast %6 : vector<4x8x1xf32> to vector<4x8x576xf32>
    %14 = arith.cmpf ogt, %12, %13 : vector<4x8x576xf32>
    %15 = vector.broadcast %3 : vector<1x1x576xf32> to vector<4x8x576xf32>
    %16 = vector.broadcast %8 : vector<4x8x1xf32> to vector<4x8x576xf32>
    %17 = arith.cmpf olt, %15, %16 : vector<4x8x576xf32>
    %18 = arith.andi %14, %17 : vector<4x8x576xi1>
    %cst_8 = arith.constant 1.000000e+00 : f32
    %19 = vector.broadcast %cst_8 : f32 to vector<1x1x576xf32>
    %20 = arith.addf %5, %19 : vector<1x1x576xf32>
    %21 = vector.broadcast %20 : vector<1x1x576xf32> to vector<4x8x576xf32>
    %22 = vector.broadcast %7 : vector<4x8x1xf32> to vector<4x8x576xf32>
    %23 = arith.cmpf ogt, %21, %22 : vector<4x8x576xf32>
    %24 = arith.andi %18, %23 : vector<4x8x576xi1>
    %25 = vector.broadcast %5 : vector<1x1x576xf32> to vector<4x8x576xf32>
    %26 = vector.broadcast %9 : vector<4x8x1xf32> to vector<4x8x576xf32>
    %27 = arith.cmpf olt, %25, %26 : vector<4x8x576xf32>
    %28 = arith.andi %24, %27 : vector<4x8x576xi1>
    %29 = arith.extui %28 : vector<4x8x576xi1> to vector<4x8x576xi32>
    %30 = arith.sitofp %29 : vector<4x8x576xi32> to vector<4x8x576xf32>
    %31 = arith.truncf %30 : vector<4x8x576xf32> to vector<4x8x576xbf16>
    "tpu.trace_start"() <{level = 10 : i32, message = "gnt,gtd->gnd"}> : () -> ()
    %cst_9 = arith.constant dense<0.000000e+00> : vector<4x8x128xf32>
    %32 = tpu.matmul %31, %0, %cst_9 {dimension_numbers = #tpu.dot_dimension_numbers<[2], [1], [1], [2], [0, 0, 0, 1, 1, 2], [0], [0]>} : vector<4x8x576xbf16>, vector<4x576x128xbf16>, vector<4x8x128xf32> -> vector<4x8x128xf32>
    "tpu.trace_stop"() : () -> ()
    %33 = arith.mulf %32, %32 : vector<4x8x128xf32>
    %cst_10 = arith.constant dense<0.000000e+00> : vector<4x8xf32>
    %34 = vector.multi_reduction <add>, %33, %cst_10 [2] : vector<4x8x128xf32> to vector<4x8xf32>
    %35 = vector.shape_cast %34 : vector<4x8xf32> to vector<4x8x1xf32>
    %cst_11 = arith.constant 1.000000e-24 : f32
    %36 = vector.broadcast %cst_11 : f32 to vector<4x8x1xf32>
    %37 = arith.maximumf %35, %36 : vector<4x8x1xf32>
    %38 = math.rsqrt %37 : vector<4x8x1xf32>
    %39 = vector.broadcast %38 : vector<4x8x1xf32> to vector<4x8x128xf32>
    %40 = arith.mulf %32, %39 : vector<4x8x128xf32>
    %c0_12 = arith.constant 0 : index
    %c0_13 = arith.constant 0 : index
    %c0_14 = arith.constant 0 : index
    %41 = vector.load %arg7[%c0_12, %c0_13, %c0_14] : memref<4x8x128xf32, #tpu.memory_space<vmem>>, vector<4x8x128xf32>
    tpu.vector_store %arg7[%c0_12, %c0_13, %c0_14], %40 {strides = array<i32>} : memref<4x8x128xf32, #tpu.memory_space<vmem>>, vector<4x8x128xf32>,
    %42 = vector.shape_cast %40 : vector<4x8x128xf32> to vector<32x128xf32>
    %43 = arith.truncf %42 : vector<32x128xf32> to vector<32x128xbf16>
    %c0_15 = arith.constant 0 : index
    %c0_16 = arith.constant 0 : index
    %44 = vector.load %arg5[%c0_15, %c0_16] : memref<128x128xbf16, #tpu.memory_space<vmem>>, vector<128x128xbf16>
    %cst_17 = arith.constant dense<0.000000e+00> : vector<32x128xf32>
    %45 = tpu.matmul %43, %44, %cst_17 {dimension_numbers = #tpu.dot_dimension_numbers<[1], [0], [0], [1], [0, 0, 1, 1], [], []>} : vector<32x128xbf16>, vector<128x128xbf16>, vector<32x128xf32> -> vector<32x128xf32>
    %46 = vector.shape_cast %45 : vector<32x128xf32> to vector<4x8x128xf32>
    %c0_18 = arith.constant 0 : index
    %c0_19 = arith.constant 0 : index
    %47 = vector.load %arg6[%c0_18, %c0_19] : memref<2x128xf32, #tpu.memory_space<vmem>>, vector<1x128xf32>
    %48 = vector.shape_cast %47 : vector<1x128xf32> to vector<1x1x128xf32>
    %49 = vector.broadcast %48 : vector<1x1x128xf32> to vector<4x8x128xf32>
    %50 = arith.addf %46, %49 : vector<4x8x128xf32>
    %c1_20 = arith.constant 1 : index
    %c0_21 = arith.constant 0 : index
    %51 = vector.load %arg6[%c1_20, %c0_21] : memref<2x128xf32, #tpu.memory_space<vmem>>, vector<1x128xf32>
    %c0_22 = arith.constant 0 : index
    %c0_23 = arith.constant 0 : index
    %c0_24 = arith.constant 0 : index
    %52 = vector.load %arg3[%c0_22, %c0_23, %c0_24] : memref<4x8x128xf32, #tpu.memory_space<vmem>>, vector<4x8x128xf32>
    %53 = vector.shape_cast %51 : vector<1x128xf32> to vector<1x1x128xf32>
    %54 = vector.broadcast %53 : vector<1x1x128xf32> to vector<4x8x128xf32>
    %55 = arith.mulf %54, %52 : vector<4x8x128xf32>
    %56 = arith.addf %50, %55 : vector<4x8x128xf32>
    %c0_25 = arith.constant 0 : index
    %c0_26 = arith.constant 0 : index
    %c0_27 = arith.constant 0 : index
    %57 = vector.load %arg8[%c0_25, %c0_26, %c0_27] : memref<4x8x128xf32, #tpu.memory_space<vmem>>, vector<4x8x128xf32>
    tpu.vector_store %arg8[%c0_25, %c0_26, %c0_27], %56 {strides = array<i32>} : memref<4x8x128xf32, #tpu.memory_space<vmem>>, vector<4x8x128xf32>,
    return
  }
  func.func @transform_0(%arg0: i32) -> (i32, i32, i32) {
    %c0_i32 = arith.constant 0 : i32
    %c0_i32_0 = arith.constant 0 : i32
    %c0_i32_1 = arith.constant 0 : i32
    return %arg0, %c0_i32, %c0_i32_0 : i32, i32, i32
  }
  func.func @transform_1(%arg0: i32) -> (i32, i32, i32) {
    %c0_i32 = arith.constant 0 : i32
    %c0_i32_0 = arith.constant 0 : i32
    %c0_i32_1 = arith.constant 0 : i32
    return %arg0, %c0_i32, %c0_i32_0 : i32, i32, i32
  }
  func.func @transform_2(%arg0: i32) -> (i32, i32, i32) {
    %c0_i32 = arith.constant 0 : i32
    %c0_i32_0 = arith.constant 0 : i32
    %c0_i32_1 = arith.constant 0 : i32
    return %arg0, %c0_i32, %c0_i32_0 : i32, i32, i32
  }
  func.func @transform_3(%arg0: i32) -> (i32, i32) {
    %c0_i32 = arith.constant 0 : i32
    %c0_i32_0 = arith.constant 0 : i32
    %c0_i32_1 = arith.constant 0 : i32
    return %c0_i32, %c0_i32_0 : i32, i32
  }
  func.func @transform_4(%arg0: i32) -> (i32, i32) {
    %c0_i32 = arith.constant 0 : i32
    %c0_i32_0 = arith.constant 0 : i32
    %c0_i32_1 = arith.constant 0 : i32
    return %c0_i32, %c0_i32_0 : i32, i32
  }
  func.func @transform_5(%arg0: i32) -> (i32, i32) {
    %c0_i32 = arith.constant 0 : i32
    %c0_i32_0 = arith.constant 0 : i32
    %c0_i32_1 = arith.constant 0 : i32
    return %c0_i32, %c0_i32_0 : i32, i32
  }
  func.func @transform_6(%arg0: i32) -> (i32, i32, i32) {
    %c0_i32 = arith.constant 0 : i32
    %c0_i32_0 = arith.constant 0 : i32
    %c0_i32_1 = arith.constant 0 : i32
    return %arg0, %c0_i32, %c0_i32_0 : i32, i32, i32
  }
  func.func @transform_7(%arg0: i32) -> (i32, i32, i32) {
    %c0_i32 = arith.constant 0 : i32
    %c0_i32_0 = arith.constant 0 : i32
    %c0_i32_1 = arith.constant 0 : i32
    return %arg0, %c0_i32, %c0_i32_0 : i32, i32, i32
  }
}

</mosaic_0001>

<bundles_post_ra>
// kernel: tpu_custom_call.1
= control target key start
LH: loop header
LB: loop body
LE: loop exit
PB: predicated region body
PF: predicated region fallthrough
CT: control target
= control target key end

     0   :  { %s4866_s0 = inlined_call_operand.hbm [shape: bf16[8,576,128], index: 0, kind: input, shape index: {}]   ;;  %s4867_s1 = inlined_call_operand.vmem [shape: f32[8,8,4], index: 1, kind: input, shape index: {}]   ;;  %s4868_s2 = inlined_call_operand.hbm [shape: f32[8,8,128], index: 2, kind: input, shape index: {}]   ;;  %s4869_s3 = inlined_call_operand.hbm [shape: f32[2,576], index: 3, kind: input, shape index: {}]   ;;  %s4870_s4 = inlined_call_operand.hbm [shape: bf16[128,128], index: 4, kind: input, shape index: {}]   ;;  %s4871_s5 = inlined_call_operand.hbm [shape: f32[2,128], index: 5, kind: input, shape index: {}]   ;;  %s4872_s6 = inlined_call_operand.hbm [shape: f32[8,8,128], index: 6, kind: output, shape index: {0}]   ;;  %s4873_s7 = inlined_call_operand.hbm [shape: f32[8,8,128], index: 7, kind: output, shape index: {1}]  }
   0x1   :  { %4882 = sst [smem:[#allocation21_spill]] %s4866_s0 }
   0x2   :  { %4883 = sst [smem:[#allocation22_spill]] %s4869_s3 }
   0x3   :  { %4884 = sst [smem:[#allocation23_spill]] %s4870_s4 }
   0x4   :  { %4885 = sst [smem:[#allocation24_spill]] %s4871_s5 }
   0x5   :  { %13 = vsyncpa [#allocation3], 0 }
   0x6   :  { %15 = vsyncpa [#allocation3 + $0x1], 0 }
   0x7   :  { %16 = vsyncpa [#allocation6], 0 }
   0x8   :  { %18 = vsyncpa [#allocation6 + $0x1], 0 }
   0x9   :  { %19 = vsyncpa [#allocation9], 0 }
   0xa   :  { %20 = vsyncpa [#allocation4], 0 }
   0xb   :  { %22 = vsyncpa [#allocation4 + $0x1], 0 }
   0xc   :  { %23 = vsyncpa [#allocation13], 0 }
   0xd   :  { %25 = vsyncpa [#allocation13 + $0x1], 0  ;;  %s3914_s24 = smov 0   ;;  %s3916_s25 = smov 0  }
   0xe   :  { %s3918_s26 = smov 0   ;;  %s3920_s27 = smov 0  }
   0xf LB: > { %s3935_s28 = sadd.s32 4294967295, %s3852_s27   ;;  %s2817_s29 = sadd.s32 4294967294, %s3852_s27   ;;  %s3852_s27 = sphi %s3920_s27, %s4957_s27   ;;  %s3848_s26 = sphi %s3918_s26, %s4956_s26   ;;  %s3844_s25 = sphi %s3916_s25, %s4955_s25   ;;  %s3840_s24 = sphi %s3914_s24, %s4954_s24  }
  0x10   : > { %p51_p0 = scmp.ne.s32.totalorder %s3844_s25, %s3840_s24  ;;  %p4874_p1 = scmp.eq.s32.totalorder %s3935_s28, 0 }
  0x11   : > { %p196_p3 = scmp.eq.s32.totalorder %s2817_s29, 1  ;;  %p2818_p5 = scmp.ge.s32.totalorder %s3852_s27, 1 }
  0x12   : > { %p3944_p4 = por %p4874_p1, %p51_p0  ;;  %p229_p7 = scmp.lt.s32.totalorder %s3852_s27, 3 }
  0x13   : > { %p3949_p6 = por %p196_p3, %p51_p0  ;;  %s3854_s10 = smov [#allocation7]  }
  0x14   : > { %s4886_s30 = scalar_select %p3944_p4, 1, 0 }
  0x15   : > { %s4887_s8 = scalar_select %p3949_p6, 1, 0 }
  0x16   : > { %p3954_p8 = pnand %p2818_p5, %p229_p7  ;;  %s242_s11 = sshll.u32 %s3854_s10, 4  ;;  %s243_s11 = int_to_ptr.vmem [resolvable:$true] %s242_s11 }
  0x17   : > { %s3855_s12 = smov [#allocation8]   ;;  %s3856_s15 = smov [#allocation10]  }
  0x18   : > { %s4888_s9 = scalar_select %p3954_p8, 1, 0 }
  0x19   : > { %p3356_p10 = pneg %p3954_p8  ;;  %s252_s13 = sshll.u32 %s3855_s12, 4  ;;  %s253_s13 = int_to_ptr.vmem [resolvable:$true] %s252_s13 }
  0x1a   : > { %s266_s16 = sshll.u32 %s3856_s15, 4  ;;  %s3623_s17 = scalar_lea.vmem %s243_s11, 160  ;;  %s267_s16 = int_to_ptr.vmem [resolvable:$true] %s266_s16 }
  0x1b   : > { %p3963_p11 = pnand %p3356_p10, %p4874_p1  ;;  %p3624_p13 = scmp.ne.s32.totalorder %s243_s11, %s3623_s17 }
  0x1c   : > { %p3631_p5 = scmp.lt.s32.totalorder %s243_s11, %s243_s11  ;;  %p3632_p7 = scmp.lt.s32.totalorder %s3623_s17, %s3623_s17 }
  0x1d   : > { %p3614_p12 = pneg %p3963_p11 }
  0x1e   : > { %p3633_p9 = por %p3632_p7, %p3631_p5 }
  0x1f   : > { %p3626_p0 = pnand %p3624_p13, %p3614_p12 }
  0x21   : > { %p3627_p3 = pneg %p3626_p0 }
  0x23   : > { %p3634_p10 = pnand %p3633_p9, %p3627_p3 }
  0x25   : > { %3637 = shalt.err (!%p3634_p10)
}
  0x26   : > { %s4890_s3 = sld [smem:[#allocation22_spill]]  ;;  %s3649_s20 = scalar_lea.vmem %s253_s13, 1024 }
  0x27   : > { %p3650_p1 = scmp.ne.s32.totalorder %s253_s13, %s3649_s20  ;;  %p3657_p13 = scmp.lt.s32.totalorder %s253_s13, %s253_s13 }
  0x28   : > { %p3658_p0 = scmp.lt.s32.totalorder %s3649_s20, %s3649_s20 }
  0x29   : > { %p3652_p2 = pnand %p3650_p1, %p3614_p12 }
  0x2a   : > { %p3659_p4 = por %p3658_p0, %p3657_p13 }
  0x2b   : > { %p3653_p6 = pneg %p3652_p2 }
  0x2c   : > { %3359 = dma.hbm_to_vmem [thread:$0]  (!%p3963_p11), %s4890_s3, 160, %s243_s11, [#allocation6]  }
  0x2d   : > { %p3660_p8 = pnand %p3659_p4, %p3653_p6 }
  0x2f   : > { %3663 = shalt.err (!%p3660_p8)
}
  0x30   : > { %s4877_s21 = smov 64   ;;  %s4878_s22 = smov 4  }
  0x31   : > { %s4891_s4 = sld [smem:[#allocation23_spill]]  ;;  %s3675_s10 = scalar_lea.vmem %s267_s16, 32 }
  0x32   : > { %p3676_p1 = scmp.ne.s32.totalorder %s267_s16, %s3675_s10  ;;  %p3683_p6 = scmp.lt.s32.totalorder %s267_s16, %s267_s16 }
  0x33   : > { %p3684_p8 = scmp.lt.s32.totalorder %s3675_s10, %s3675_s10 }
  0x34   : > { %p3678_p2 = pnand %p3676_p1, %p3614_p12 }
  0x35   : > { %p3685_p9 = por %p3684_p8, %p3683_p6 }
  0x36   : > { %p3679_p4 = pneg %p3678_p2 }
  0x37   : > { %3362 = dma.hbm_to_vmem [thread:$0]  (!%p3963_p11), %s4891_s4, 1024, %s253_s13, [#allocation9], %s4877_s21, %s4877_s21, %s4878_s22  }
  0x38   : > { %p3686_p3 = pnand %p3685_p9, %p3679_p4 }
  0x3a   : > { %3689 = shalt.err (!%p3686_p3)
}
  0x3b   : > { %s4892_s5 = sld [smem:[#allocation24_spill]]  ;;  %s3997_s13 = sadd.s32 1, %s3852_s27  }
  0x3c   : > { %s35_s14 = ssub.s32 %s3852_s27, %s3997_s13  ;;  %s38_s15 = sadd.s32 1, %s3848_s26 }
  0x3d   : > { %p36_p12 = scmp.eq.s32.totalorder %s35_s14, 0  ;;  %p45_p5 = scmp.ne.s32.totalorder %s3848_s26, %s3844_s25 }
  0x3e   : > { %p46_p7 = scmp.eq.s32.totalorder %s3852_s27, 0  ;;  %p3383_p10 = scmp.lt.s32.totalorder %s3852_s27, 2 }
  0x3f   : > { %s4007_s17 = scalar_select %p36_p12, %s3848_s26, %s38_s15  }
  0x40   : > { %p47_p13 = por %p46_p7, %p45_p5  ;;  %p4894_p0 = scmp.eq.s32.totalorder %s3935_s28, 1 }
  0x41   : > { %3365 = dma.hbm_to_vmem [thread:$0]  (!%p3963_p11), %s4892_s5, 32, %s267_s16, [#allocation9]  }
  0x42   : > { %4893 = sst [smem:[#allocation20_spill]] %s4007_s17  ;;  %p4011_p1 = por %p4894_p0, %p45_p5 }
  0x43   : > { %s4016_s19 = sand.u32 1, %s3848_s26   ;;  %s3334_s16 = smul.u32 18432, %s3852_s27 }
  0x44   : > { %s3333_s20 = smul.u32 1152, %s4016_s19  ;;  %s4896_s0 = sld [smem:[#allocation21_spill]] }
  0x45   : > { %p4025_p11 = pnand %p3383_p10, %p47_p13  ;;  %s278_s21 = scalar_lea.sflag [#allocation3], %s4016_s19 }
  0x46   : > { %s281_s14 = scalar_lea.vmem [#allocation2], %s3333_s20 }
  0x47   : > { %s289_s15 = sshll.u32 %s281_s14, 4  ;;  %p3692_p4 = pneg %p4025_p11  ;;  %s4030_s15 = int_to_ptr.vmem [resolvable:$true] %s289_s15 }
  0x4a   : > { %s4023_s10 = scalar_lea.hbm %s4896_s0, %s3334_s16  ;;  %s3695_s29 = scalar_lea.hbm %s4896_s0, 36864 }
  0x4b   : > { %s3690_s22 = scalar_lea.hbm %s4023_s10, 18432  ;;  %p3696_p9 = scmp.lt.s32.totalorder %s4023_s10, %s4896_s0 }
  0x4c   : > { %p3691_p2 = scmp.ne.s32.totalorder %s4023_s10, %s3690_s22  ;;  %p3697_p3 = scmp.lt.s32.totalorder %s3695_s29, %s3690_s22 }
  0x4e   : > { %p3693_p6 = pnand %p3692_p4, %p3691_p2  ;;  %p3698_p12 = por %p3697_p3, %p3696_p9 }
  0x50   : > { %p3694_p8 = pneg %p3693_p6 }
  0x52   : > { %p3699_p5 = pnand %p3698_p12, %p3694_p8 }
  0x54   : > { %3702 = shalt.err (!%p3699_p5)
}
  0x55   : > { %s3703_s20 = scalar_lea.vmem %s4030_s15, 18432  ;;  %s3859_s14 = smov [#allocation2]  }
  0x56   : > { %p3704_p7 = scmp.ne.s32.totalorder %s4030_s15, %s3703_s20  ;;  %s3708_s16 = sshll.u32 %s3859_s14, 4  ;;  %s3709_s16 = int_to_ptr.vmem [resolvable:$false] %s3708_s16 }
  0x57   : > { %s3710_s23 = scalar_lea.vmem %s3709_s16, 36864  ;;  %p3711_p0 = scmp.lt.s32.totalorder %s4030_s15, %s3709_s16 }
  0x58   : > { %p3706_p10 = pnand %p3704_p7, %p3692_p4  ;;  %p3712_p2 = scmp.lt.s32.totalorder %s3710_s23, %s3703_s20 }
  0x5a   : > { %p3707_p13 = pneg %p3706_p10  ;;  %p3713_p6 = por %p3712_p2, %p3711_p0 }
  0x5c   : > { %p3714_p9 = pnand %p3713_p6, %p3707_p13 }
  0x5e   : > { %3717 = shalt.err (!%p3714_p9)
}
  0x5f   : > { %s4898_s3 = smov 4   ;;  %s4899_s4 = smov 64  }
  0x60   : > { %3369 = dma.hbm_to_vmem [thread:$0]  (!%p4025_p11), %s4023_s10, 18432, %s4030_s15, %s278_s21, %s4899_s4, %s4899_s4, %s4898_s3  }
  0x61   : > { %s2826_s22 = sshll.u32 %s4016_s19, 5  ;;  %s3056_s29 = sshll.u32 %s3852_s27, 9 }
  0x62   : > { %s4067_s16 = scalar_lea.hbm %s4868_s2, %s3056_s29  ;;  %s312_s23 = scalar_lea.vmem [#allocation5], %s2826_s22 }
  0x63   : > { %s319_s12 = sshll.u32 %s312_s23, 4  ;;  %s4900_s0 = sand.u32 1, %s3852_s27   ;;  %s4069_s12 = int_to_ptr.vmem [resolvable:$true] %s319_s12 }
  0x64   : > { %s4073_s5 = scalar_lea.sflag [#allocation6], %s4900_s0  ;;  %s3718_s17 = scalar_lea.hbm %s4067_s16, 512 }
  0x65   : > { %p3719_p8 = scmp.ne.s32.totalorder %s4067_s16, %s3718_s17  ;;  %s3723_s10 = scalar_lea.hbm %s4868_s2, 1024 }
  0x66   : > { %p3724_p5 = scmp.lt.s32.totalorder %s4067_s16, %s4868_s2  ;;  %p3725_p7 = scmp.lt.s32.totalorder %s3723_s10, %s3718_s17 }
  0x67   : > { %p3721_p3 = pnand %p3719_p8, %p3692_p4 }
  0x68   : > { %p3726_p10 = por %p3725_p7, %p3724_p5 }
  0x69   : > { %p3722_p12 = pneg %p3721_p3 }
  0x6b   : > { %p3727_p13 = pnand %p3726_p10, %p3722_p12 }
  0x6d   : > { %3730 = shalt.err (!%p3727_p13)
}
  0x6e   : > { %s3731_s0 = scalar_lea.vmem %s4069_s12, 512  ;;  %s3860_s4 = smov [#allocation5]  }
  0x6f   : > { %p3732_p0 = scmp.ne.s32.totalorder %s4069_s12, %s3731_s0  ;;  %s3736_s22 = sshll.u32 %s3860_s4, 4  ;;  %s3737_s22 = int_to_ptr.vmem [resolvable:$false] %s3736_s22 }
  0x70   : > { %s3738_s29 = scalar_lea.vmem %s3737_s22, 1024  ;;  %p3739_p9 = scmp.lt.s32.totalorder %s4069_s12, %s3737_s22 }
  0x71   : > { %p3734_p2 = pnand %p3732_p0, %p3692_p4  ;;  %p3740_p8 = scmp.lt.s32.totalorder %s3738_s29, %s3731_s0 }
  0x73   : > { %p3735_p6 = pneg %p3734_p2  ;;  %p3741_p3 = por %p3740_p8, %p3739_p9 }
  0x75   : > { %p3742_p5 = pnand %p3741_p3, %p3735_p6 }
  0x77   : > { %3745 = shalt.err (!%p3742_p5)
}
  0x78   : > { %s3861_s17 = smov 128   ;;  %s3862_s20 = smov 8  }
  0x79   : > { %3372 = dma.hbm_to_vmem [thread:$0]  (!%p4025_p11), %s4067_s16, 512, %s4069_s12, %s4073_s5, %s3861_s17, %s3861_s17, %s3862_s20  }
  0x7a   : > { %p4901_p4 = scmp.ne.s32.totalorder %s4888_s9, 0 }
  0x7b   : > { %s4101_s14 = sand.u32 (!%p4901_p4), 1, %s3844_s25   ;;  %p4902_p12 = scmp.ne.s32.totalorder (!%p4901_p4), %s4886_s30, 0 }
  0x7c   : > { %331 = sbr.rel (%p4901_p4) target bundleno = 1009 (0x3f1), region = 44  ;;  %s334_s21 = scalar_lea.sflag (!%p4901_p4), [#allocation3], %s4101_s14 }
  0x7d   : > { %s3335_s23 = smul.u32 (!%p4901_p4), 1152, %s4101_s14 }
  0x7f   : > { %s4105_s19 = scalar_lea.vmem (!%p4901_p4), [#allocation2], %s3335_s23 }
  0x81   : > { %3815 = dma.done.wait (%p4902_p12), %s334_s21, 18432  }
  0x82   : > { %3817 = vsyncadd (%p4902_p12), %s334_s21, 4294948864  ;;  %s342_s5 = sand.u32 1, %s3935_s28   ;;  %s4113_s9 = sshll.u32 %s4101_s14, 5 }
  0x83   : > { %s343_s11 = scalar_lea.sflag [#allocation6], %s342_s5  ;;  %s4116_s12 = scalar_lea.vmem [#allocation5], %s4113_s9 }
  0x84   : > { %3819 = dma.done.wait (%p4902_p12), %s343_s11, 512  }
  0x85   : > { %3821 = vsyncadd (%p4902_p12), %s343_s11, 4294966784  ;;  %p4903_p11 = scmp.eq.s32.totalorder %s3935_s28, 0 }
  0x87   : > { %3823 = dma.done.wait (%p4903_p11), [#allocation6], 160   ;;  %p4904_p7 = pmov %p4903_p11 }
  0x89   : > { %3825 = vsyncadd (%p4904_p7), [#allocation6], 4294967136  ;;  %p4905_p10 = pmov %p4904_p7 }
  0x8a   : > { %p4906_p13 = pmov %p4904_p7 }
  0x8b   : > { %3827 = dma.done.wait (%p4905_p10), [#allocation9], 1056  }
  0x8c   : > { %3829 = vsyncadd (%p4906_p13), [#allocation9], 4294966240  ;;  %s2836_s16 = sshll.u32 %s3935_s28, 2  ;;  %v3863_v0 = vmov 1   ;;  %v3864_v1 = vmov 0   ;;  %v3452_v3 = vld [vmem:[%s4105_s19 + $0x78] sm:$0xff]   ;;  %v712_v42 = vlaneseq }
  0x8d   : > { %3438 = vset.pattern.permute.xlu1 %v3863_v0  ;;  %3436 = vset.pattern.permute.xlu0 %v3864_v1  ;;  %p406_p0 = scmp.lt.s32.totalorder %s2836_s16, 7  ;;  %v3453_v4 = vld [vmem:[%s4105_s19 + $0xf8] sm:$0xff]   ;;  %v3865_v7 = vmov 3   ;;  %v3866_v8 = vmov 2   ;;  %v3456_v10 = vld [vmem:[%s4105_s19 + $0x70] sm:$0xff]   ;;  %v3460_v14 = vld [vmem:[%s4105_s19 + $0x68] sm:$0xff]  }
  0x8e   : > { %3059 = vmatprep.subr.bf16.mxu0 %v3452_v3  ;;  %v3454_v5 = vld [vmem:[%s4105_s19 + $0x38] sm:$0xff]   ;;  %3081 = vmatprep.subr.bf16.mxu1 %v3453_v4  ;;  %v3457_v11 = vld [vmem:[%s4105_s19 + $0xf0] sm:$0xff]   ;;  %v3461_v15 = vld [vmem:[%s4105_s19 + $0xe8] sm:$0xff]   ;;  %v3867_v41 = vmov 0.0   ;;  %v713_v44 = vshrl.u32 %v712_v42, 7  ;;  %v4924_v42 = vmov 0 }
  0x8f   : > { %s4959_s16 = smov (!%p406_p0, %s2836_s16), 7  ;;  %v3455_v6 = vld [vmem:[%s4105_s19 + $0xb8] sm:$0xff]   ;;  %3060 = vmatpush3.bf16.msra.mxu0 %v3454_v5  ;;  %v3458_v12 = vld [vmem:[%s4105_s19 + $0x30] sm:$0xff]   ;;  %v3462_v16 = vld [vmem:[%s4105_s19 + $0x28] sm:$0xff]   ;;  %s396_s0 = scalar_lea.vmem [#allocation11], %s4113_s9 }
  0x90   : > { %s2837_s30 = sshll.u32 %s4959_s16, 3  ;;  %3082 = vmatpush3.bf16.msra.mxu1 %v3455_v6  ;;  %3061 = vmatprep.subr.bf16.mxu0 %v3456_v10  ;;  %v3459_v13 = vld [vmem:[%s4105_s19 + $0xb0] sm:$0xff]   ;;  %v3463_v17 = vld [vmem:[%s4105_s19 + $0xa8] sm:$0xff]   ;;  %v3464_v18 = vld [vmem:[%s4105_s19 + $0x60] sm:$0xff]   ;;  %v718_v49 = vsub.s32 1, %v713_v44  ;;  %v726_v57 = vsub.s32 3, %v713_v44 }
  0x91   : > { %s4136_s3 = scalar_lea.vmem %s4867_s1, %s2837_s30  ;;  %3083 = vmatprep.subr.bf16.mxu1 %v3457_v11  ;;  %v3465_v19 = vld [vmem:[%s4105_s19 + $0xe0] sm:$0xff]   ;;  %v3468_v23 = vld [vmem:[%s4105_s19 + $0x58] sm:$0xff]   ;;  %v3472_v28 = vld [vmem:[%s4105_s19 + $0x50] sm:$0xff]   ;;  %v4210_v58 = vsub.s32 4, %v713_v44  ;;  %v714_v61 = vsub.s32 0, %v713_v44  ;;  %v722_v4 = vsub.s32 2, %v713_v44 }
  0x92   : > { %v703_v2 = vld [vmem:[%s4136_s3] sm:$0xff]  ;;  %v704_v9 = vld [vmem:[%s4136_s3 + $0x8] sm:$0xff]  ;;  %v705_v20 = vld [vmem:[%s4136_s3 + $0x10] sm:$0xff]  ;;  %s2633_s4 = sshll.u32 %s396_s0, 4  ;;  %s3057_s22 = sshll.u32 %s3935_s28, 9  ;;  %s4774_s4 = int_to_ptr.vmem [resolvable:$true] %s2633_s4 }
  0x93   : > { %887 = vperm.xlu1 %3438, %v703_v2   ;;  %739 = vperm.xlu0 %3436, %v703_v2   ;;  %v3466_v21 = vld [vmem:[%s4105_s19 + $0x20] sm:$0xff]   ;;  %v3469_v24 = vld [vmem:[%s4105_s19 + $0xd8] sm:$0xff]   ;;  %v3473_v29 = vld [vmem:[%s4105_s19 + $0xd0] sm:$0xff]   ;;  %s4782_s20 = scalar_lea.hbm %s4872_s6, %s3057_s22  ;;  %s2615_s23 = scalar_lea.sflag [#allocation4], %s4101_s14 }
  0x94   : > { %3062 = vmatpush3.bf16.msra.mxu0 %v3458_v12  ;;  %3084 = vmatpush3.bf16.msra.mxu1 %v3459_v13  ;;  %v3467_v22 = vld [vmem:[%s4105_s19 + $0xa0] sm:$0xff]   ;;  %v706_v25 = vld [vmem:[%s4136_s3 + $0x18] sm:$0xff]  ;;  %v3474_v30 = vld [vmem:[%s4105_s19 + $0x10] sm:$0xff]   ;;  %s3746_s21 = scalar_lea.vmem %s4774_s4, 512 }
  0x95   : > { %3063 = vmatprep.subr.bf16.mxu0 %v3460_v14  ;;  %3085 = vmatprep.subr.bf16.mxu1 %v3461_v15  ;;  %v3470_v26 = vld [vmem:[%s4105_s19 + $0x18] sm:$0xff]   ;;  %v3475_v31 = vld [vmem:[%s4105_s19 + $0x90] sm:$0xff]   ;;  %v3476_v32 = vld [vmem:[%s4105_s19 + $0x48] sm:$0xff]   ;;  %p3747_p2 = scmp.ne.s32.totalorder %s4774_s4, %s3746_s21 }
  0x96   : > { %v3471_v27 = vld [vmem:[%s4105_s19 + $0x98] sm:$0xff]   ;;  %v3477_v33 = vld [vmem:[%s4105_s19 + $0xc8] sm:$0xff]   ;;  %v3480_v36 = vld [vmem:[%s4105_s19 + $0x40] sm:$0xff]  }
  0x97   : > { %3439 = vset.pattern.permute.xlu1 %v3865_v7  ;;  %3437 = vset.pattern.permute.xlu0 %v3866_v8  ;;  %v3478_v34 = vld [vmem:[%s4105_s19 + $0x8] sm:$0xff]   ;;  %v3481_v37 = vld [vmem:[%s4105_s19 + $0xc0] sm:$0xff]   ;;  %v3484_v40 = vld [vmem:[%s4105_s19 + $0x218] sm:$0xff]   ;;  %p3748_p6 = pnand %p3747_p2, %p4011_p1 }
  0x98   : > { %969 = vperm.xlu1 %3439, %v703_v2   ;;  %804 = vperm.xlu0 %3437, %v703_v2   ;;  %v3479_v35 = vld [vmem:[%s4105_s19 + $0x88] sm:$0xff]   ;;  %v3482_v38 = vld [vmem:[%s4105_s19] sm:$0xff]   ;;  %v3513_v12 = vld [vmem:[%s4105_s19 + $0x2b8] sm:$0xff]  }
  0x99   : > { %3064 = vmatpush3.bf16.msra.mxu0 %v3462_v16  ;;  %3086 = vmatpush3.bf16.msra.mxu1 %v3463_v17  ;;  %v3483_v39 = vld [vmem:[%s4105_s19 + $0x80] sm:$0xff]   ;;  %v3486_v17 = vld [vmem:[%s4105_s19 + $0x1d8] sm:$0xff]   ;;  %p3749_p9 = pneg %p3748_p6 }
  0x9a   : > { %3065 = vmatprep.subr.bf16.mxu0 %v3464_v18  ;;  %3087 = vmatprep.subr.bf16.mxu1 %v3465_v19  ;;  %v707_v43 = vld [vmem:[#allocation7] ss:$2 sm:$0x1f]  ;;  %v4187_v45 = vld [vmem:[#allocation7 + $0x1] ss:$2 sm:$0x1f] }
  0x9b   : > { %v710_v48 = vadd.f32 1.0, %v707_v43  ;;  %v4194_v50 = vadd.f32 1.0, %v4187_v45  ;;  %v4196_v51 = vrot.slane %v707_v43, %v718_v49  ;;  %v4208_v56 = vrot.slane %v4187_v45, %v718_v49  ;;  %v3487_v18 = vld [vmem:[%s4105_s19 + $0x210] sm:$0xff]  }
  0x9c   : > { %3440 = vset.pattern.permute.xlu1 %v3864_v1  ;;  %808 = vperm.xlu0 %3437, %v704_v9   ;;  %v4214_v59 = vrot.slane %v707_v43, %v726_v57  ;;  %v4217_v60 = vrot.slane %v707_v43, %v4210_v58  ;;  %v4238_v3 = vrot.slane %v707_v43, %v714_v61 }
  0x9d   : > { %744 = vperm.xlu1 %3440, %v704_v9   ;;  %3066 = vmatpush3.bf16.msra.mxu0 %v3466_v21  ;;  %v4202_v54 = vrot.slane %v710_v48, %v718_v49  ;;  %v4205_v55 = vrot.slane %v4194_v50, %v718_v49  ;;  %v4227_v63 = vrot.slane %v710_v48, %v726_v57  ;;  %v3485_v21 = vld [vmem:[%s4105_s19 + $0x118] sm:$0xff]   ;;  %v3502_v49 = vld [vmem:[%s4105_s19 + $0x150] sm:$0xff]  }
  0x9e   : > { %3088 = vmatpush3.bf16.msra.mxu1 %v3467_v22  ;;  %3067 = vmatprep.subr.bf16.mxu0 %v3468_v23  ;;  %v4236_v2 = vrot.slane %v710_v48, %v4210_v58  ;;  %v4244_v6 = vrot.slane %v710_v48, %v714_v61  ;;  %v4263_v10 = vrot.slane %v707_v43, %v722_v4  ;;  %v3489_v22 = vld [vmem:[%s4105_s19 + $0x1d0] sm:$0xff]   ;;  %v3498_v43 = vld [vmem:[%s4105_s19 + $0x158] sm:$0xff]  }
  0x9f   : > { %3089 = vmatprep.subr.bf16.mxu1 %v3469_v24  ;;  %v4278_v14 = vrot.slane %v710_v48, %v722_v4  ;;  %v4285_v15 = vrot.slane %v4187_v45, %v722_v4  ;;  %v4291_v16 = vrot.slane %v4194_v50, %v722_v4  ;;  %v4313_v23 = vrot.slane %v4194_v50, %v4210_v58  ;;  %v3490_v24 = vld [vmem:[%s4105_s19 + $0x208] sm:$0xff]   ;;  %v3511_v4 = vld [vmem:[%s4105_s19 + $0x1a0] sm:$0xff]  }
  0xa0   : > { %3442 = vset.pattern.permute.xlu0 %v3865_v7  ;;  %v3505_v48 = vld [vmem:[%s4105_s19 + $0x1e8] sm:$0xff]  }
  0xa1   : > { %3441 = vset.pattern.permute.xlu1 %v3863_v0  ;;  %973 = vperm.xlu0 %3442, %v704_v9  }
  0xa2   : > { %891 = vperm.xlu1 %3441, %v704_v9   ;;  %3068 = vmatpush3.bf16.msra.mxu0 %v3470_v26  ;;  %v4259_v9 = vrot.slane %v4194_v50, %v714_v61  ;;  %v4331_v26 = vrot.slane %v4187_v45, %v4210_v58  ;;  %v3506_v58 = vld [vmem:[%s4105_s19 + $0x148] sm:$0xff]  }
  0xa3   : > { %3090 = vmatpush3.bf16.msra.mxu1 %v3471_v27  ;;  %3069 = vmatprep.subr.bf16.mxu0 %v3472_v28  ;;  %v3488_v27 = vld [vmem:[%s4105_s19 + $0x110] sm:$0xff]   ;;  %v3492_v28 = vld [vmem:[%s4105_s19 + $0x1c8] sm:$0xff]  }
  0xa4   : > { %3091 = vmatprep.subr.bf16.mxu1 %v3473_v29  ;;  %v3516_v29 = vld [vmem:[%s4105_s19 + $0x170] sm:$0xff]  }
  0xa5   : > { %3445 = vset.pattern.permute.xlu0 %v3863_v0 }
  0xa6   : > { %3443 = vset.pattern.permute.xlu1 %v3864_v1  ;;  %895 = vperm.xlu0 %3445, %v705_v20  }
  0xa7   : > { %749 = vperm.xlu1 %3443, %v705_v20   ;;  %3070 = vmatpush3.bf16.msra.mxu0 %v3474_v30  ;;  %v3493_v30 = vld [vmem:[%s4105_s19 + $0x200] sm:$0xff]  }
  0xa8   : > { %3092 = vmatpush3.bf16.msra.mxu1 %v3475_v31  ;;  %3071 = vmatprep.subr.bf16.mxu0 %v3476_v32  ;;  %v3491_v31 = vld [vmem:[%s4105_s19 + $0x108] sm:$0xff]   ;;  %v3495_v32 = vld [vmem:[%s4105_s19 + $0x1c0] sm:$0xff]  }
  0xa9   : > { %3093 = vmatprep.subr.bf16.mxu1 %v3477_v33 }
  0xaa   : > { %3448 = vset.pattern.permute.xlu0 %v3866_v8 }
  0xab   : > { %3444 = vset.pattern.permute.xlu1 %v3866_v8  ;;  %816 = vperm.xlu0 %3448, %v706_v25   ;;  %v3868_v8 = vmov 1.0|1.0  }
  0xac   : > { %812 = vperm.xlu1 %3444, %v705_v20   ;;  %3072 = vmatpush3.bf16.msra.mxu0 %v3478_v34  ;;  %v3497_v34 = vld [vmem:[%s4105_s19 + $0x1f8] sm:$0xff]  }
  0xad   : > { %3094 = vmatpush3.bf16.msra.mxu1 %v3479_v35  ;;  %3073 = vmatprep.subr.bf16.mxu0 %v3480_v36  ;;  %v3494_v35 = vld [vmem:[%s4105_s19 + $0x100] sm:$0xff]   ;;  %v3499_v36 = vld [vmem:[%s4105_s19 + $0x1b8] sm:$0xff]  }
  0xae   : > { %3095 = vmatprep.subr.bf16.mxu1 %v3481_v37 }
  0xaf   : > { %3451 = vset.pattern.permute.xlu0 %v3865_v7 }
  0xb0   : > { %3446 = vset.pattern.permute.xlu1 %v3865_v7  ;;  %3074 = vmatpush3.bf16.msra.mxu0 %v3482_v38  ;;  %v3496_v38 = vld [vmem:[%s4105_s19 + $0x198] sm:$0xff]  }
  0xb1   : > { %977 = vperm.xlu1 %3446, %v705_v20   ;;  %3096 = vmatpush3.bf16.msra.mxu1 %v3483_v39  ;;  %v3501_v39 = vld [vmem:[%s4105_s19 + $0x1f0] sm:$0xff]  }
  0xb2   : > { %3130 = vmatprep.subr.bf16.mxu0 %v3484_v40  ;;  %3265 = vmatprep.subr.bf16.mxu1 %v3867_v41 }
  0xb5   : > { %3447 = vset.pattern.permute.xlu1 %v3864_v1  ;;  %v4233_v1 = vrot.slane %v4194_v50, %v726_v57  ;;  %v3504_v50 = vld [vmem:[%s4105_s19 + $0x188] sm:$0xff]  }
  0xb6   : > { %754 = vperm.xlu1 %3447, %v706_v25  }
  0xba   : > { %3449 = vset.pattern.permute.xlu1 %v3863_v0  ;;  %v4230_v0 = vrot.slane %v4187_v45, %v726_v57  ;;  %v3554_v57 = vld [vmem:[%s4105_s19 + $0x458] sm:$0xff]  }
  0xbb   : > { %899 = vperm.xlu1 %3449, %v706_v25  }
  0xbf   : > { %3450 = vset.pattern.permute.xlu1 %v3865_v7  ;;  %v4253_v7 = vrot.slane %v4187_v45, %v714_v61  ;;  %v3508_v61 = vld [vmem:[%s4105_s19 + $0x180] sm:$0xff]  }
  0xc0   : > { %981 = vperm.xlu1 %3450, %v706_v25  }
 0x10e   : > { %v4189_v46 = vpop.permute.xlu0 %739  ;;  %v4191_v47 = vpop.permute.xlu1 %887 }
 0x10f   : > { %vm758_vm1 = vcmp.gt.f32.partialorder %v4202_v54, %v4189_v46  ;;  %vm903_vm3 = vcmp.gt.f32.partialorder %v4205_v55, %v4191_v47  ;;  %vm760_vm10 = vcmp.gt.f32.partialorder %v4227_v63, %v4189_v46  ;;  %vm905_vm13 = vcmp.gt.f32.partialorder %v4233_v1, %v4191_v47 }
 0x110   : > { %vm761_vm14 = vcmp.gt.f32.partialorder %v4236_v2, %v4189_v46 }
 0x113   : > { %v4198_v52 = vpop.permute.xlu0 %804  ;;  %v4200_v53 = vpop.permute.xlu1 %969 }
 0x114   : > { %vm820_vm0 = vcmp.lt.f32.partialorder %v4196_v51, %v4198_v52  ;;  %vm985_vm4 = vcmp.lt.f32.partialorder %v4208_v56, %v4200_v53  ;;  %vm822_vm6 = vcmp.lt.f32.partialorder %v4214_v59, %v4198_v52  ;;  %vm823_vm8 = vcmp.lt.f32.partialorder %v4217_v60, %v4198_v52 }
 0x115   : > { %vm840_vm2 = vmand %vm758_vm1, %vm820_vm0  ;;  %vm987_vm11 = vcmp.lt.f32.partialorder %v4230_v0, %v4200_v53  ;;  %vm819_vm0 = vcmp.lt.f32.partialorder %v4238_v3, %v4198_v52 }
 0x116   : > { %vm923_vm5 = vmand %vm840_vm2, %vm903_vm3 }
 0x117   : > { %v4242_v5 = vpop.permute.xlu0 %808  ;;  %vm1005_vm7 = vmand %vm923_vm5, %vm985_vm4  ;;  %vm757_vm4 = vcmp.gt.f32.partialorder %v4244_v6, %v4189_v46  ;;  %vm984_vm5 = vcmp.lt.f32.partialorder %v4253_v7, %v4200_v53 }
 0x118   : > { %v4221_v62 = vpop.permute.xlu1 %744  ;;  %vm2894_vm9 = vmpackc.low %vm1005_vm7, %vm1005_vm7  ;;  %vm902_vm7 = vcmp.gt.f32.partialorder %v4259_v9, %v4191_v47 }
 0x119   : > { %2895 = vmatprep.mubr.msk.bf16.mxu0 %vm2894_vm9, %v3868_v8  ;;  %vm842_vm12 = vmand %vm760_vm10, %vm822_vm6  ;;  %vm821_vm9 = vcmp.lt.f32.partialorder %v4263_v10, %v4198_v52  ;;  %v3507_v52 = vld [vmem:[%s4105_s19 + $0x1a8] sm:$0xff]  }
 0x11a   : > { %vm925_vm15 = vmand %vm842_vm12, %vm905_vm13  ;;  %vm759_vm13 = vcmp.gt.f32.partialorder %v4278_v14, %v4189_v46  ;;  %v3500_v46 = vld [vmem:[%s4105_s19 + $0x190] sm:$0xff]  }
 0x11b   : > { %vm4272_vm1 = vmand %vm761_vm14, %vm823_vm8  ;;  %vm986_vm14 = vcmp.lt.f32.partialorder %v4285_v15, %v4200_v53 }
 0x11c   : > { %vm1007_vm2 = vmand %vm925_vm15, %vm987_vm11  ;;  %v4276_v13 = vpop.permute.xlu0 %973 }
 0x11d   : > { %v4267_v11 = vpop.permute.xlu1 %891  ;;  %vm2898_vm3 = vmpackc.low %vm1007_vm2, %vm1007_vm2  ;;  %vm904_vm2 = vcmp.gt.f32.partialorder %v4291_v16, %v4191_v47 }
 0x11e   : > { %2899 = vmatprep.mubr.msk.bf16.mxu1 %vm2898_vm3, %v3868_v8  ;;  %vm839_vm6 = vmand %vm757_vm4, %vm819_vm0 }
 0x11f   : > { %vm922_vm8 = vmand %vm839_vm6, %vm902_vm7  ;;  %vm765_vm6 = vcmp.gt.f32.partialorder %v4227_v63, %v4221_v62  ;;  %vm827_vm7 = vcmp.lt.f32.partialorder %v4214_v59, %v4242_v5 }
 0x120   : > { %vm1004_vm10 = vmand %vm922_vm8, %vm984_vm5 }
 0x121   : > { %v4301_v20 = vpop.permute.xlu0 %895  ;;  %vm2896_vm12 = vmpackc.low %vm1004_vm10, %vm1004_vm10  ;;  %vm910_vm10 = vcmp.gt.f32.partialorder %v4233_v1, %v4267_v11 }
 0x122   : > { %v4297_v19 = vpop.permute.xlu1 %749  ;;  %vm914_vm15 = vcmp.gt.f32.partialorder %v4291_v16, %v4301_v20  ;;  %2897 = vmatmul.mubr.msk.bf16.vlgmr.msra.gmra.mxu0 %vm2896_vm12, %v3868_v8  ;;  %vm841_vm0 = vmand %vm759_vm13, %vm821_vm9  ;;  %vm906_vm9 = vcmp.gt.f32.partialorder %v4313_v23, %v4191_v47  ;;  %vm992_vm13 = vcmp.lt.f32.partialorder %v4230_v0, %v4276_v13  ;;  %v3503_v47 = vld [vmem:[%s4105_s19 + $0x1b0] sm:$0xff]  }
 0x123   : > { %vm769_vm11 = vcmp.gt.f32.partialorder %v4278_v14, %v4297_v19  ;;  %vm924_vm3 = vmand %vm841_vm0, %vm904_vm2  ;;  %3131 = vmatpush3.bf16.msra.mxu0 %v3486_v17  ;;  %vm988_vm2 = vcmp.lt.f32.partialorder %v4331_v26, %v4200_v53  ;;  %v3509_v53 = vld [vmem:[%s4105_s19 + $0x1e0] sm:$0xff]   ;;  %v3558_v17 = vld [vmem:[%s4105_s19 + $0x450] sm:$0xff]  }
 0x124   : > { %vm1006_vm4 = vmand %vm924_vm3, %vm986_vm14  ;;  %3132 = vmatprep.subr.bf16.mxu0 %v3487_v18  ;;  %v3510_v18 = vld [vmem:[%s4105_s19 + $0x140] sm:$0xff]  }
 0x125   : > { %vm2900_vm5 = vmpackc.low %vm1006_vm4, %vm1006_vm4 }
 0x126   : > { %2901 = vmatmul.mubr.msk.bf16.vlgmr.msra.gmra.mxu1 %vm2900_vm5, %v3868_v8  ;;  %vm4340_vm12 = vmand %vm4272_vm1, %vm906_vm9  ;;  %vm4880_vm1 = vmmov 0   ;;  %vm763_vm5 = vcmp.gt.f32.partialorder %v4202_v54, %v4221_v62  ;;  %vm908_vm9 = vcmp.gt.f32.partialorder %v4205_v55, %v4267_v11 }
 0x127   : > { %v4319_v25 = vpop.permute.xlu1 %812  ;;  %3266 = vmatpush3.bf16.msra.mxu1 %v3485_v21  ;;  %3133 = vmatpush3.bf16.msra.mxu0 %v3489_v22  ;;  %vm847_vm14 = vmand %vm765_vm6, %vm827_vm7  ;;  %vm825_vm6 = vcmp.lt.f32.partialorder %v4196_v51, %v4242_v5  ;;  %v3512_v21 = vld [vmem:[%s4105_s19 + $0x178] sm:$0xff]  }
 0x128   : > { %vm831_vm8 = vcmp.lt.f32.partialorder %v4263_v10, %v4319_v25  ;;  %3267 = vmatprep.subr.bf16.mxu1 %v3867_v41  ;;  %3134 = vmatprep.subr.bf16.mxu0 %v3490_v24  ;;  %vm930_vm0 = vmand %vm847_vm14, %vm910_vm10  ;;  %v3515_v22 = vld [vmem:[%s4105_s19 + $0x278] sm:$0xff]   ;;  %v3517_v24 = vld [vmem:[%s4105_s19 + $0x2b0] sm:$0xff]  }
 0x129   : > { %3273 = vmatprep.mubr.msk.bf16.mxu1 %vm4880_vm1, %v3867_v41  ;;  %vm1012_vm3 = vmand %vm930_vm0, %vm992_vm13  ;;  %vm990_vm0 = vcmp.lt.f32.partialorder %v4208_v56, %v4276_v13 }
 0x12a   : > { %vm2943_vm4 = vmpackc.low %vm1012_vm3, %vm1012_vm3  ;;  %vm770_vm3 = vcmp.gt.f32.partialorder %v4227_v63, %v4297_v19 }
 0x12b   : > { %3268 = vmatpush3.bf16.msra.mxu1 %v3488_v27  ;;  %3135 = vmatpush3.bf16.msra.mxu0 %v3492_v28  ;;  %vm1008_vm10 = vmand %vm4340_vm12, %vm988_vm2  ;;  %vm826_vm2 = vcmp.lt.f32.partialorder %v4263_v10, %v4242_v5  ;;  %v3514_v28 = vld [vmem:[%s4105_s19 + $0x138] sm:$0xff]   ;;  %v3557_v27 = vld [vmem:[%s4105_s19 + $0x2d0] sm:$0xff]  }
 0x12c   : > { %v4357_v33 = vpop.permute.xlu1 %977  ;;  %3269 = vmatprep.subr.bf16.mxu1 %v3867_v41  ;;  %2944 = vmatprep.mubr.msk.bf16.mxu0 %vm2943_vm4, %v3868_v8  ;;  %vm845_vm13 = vmand %vm763_vm5, %vm825_vm6  ;;  %v2842_v40 = vsel %vm1008_vm10, 1.0, %v3867_v41  ;;  %vm764_vm4 = vcmp.gt.f32.partialorder %v4278_v14, %v4221_v62  ;;  %vm4879_vm5 = vcmask 523264   ;;  %vm909_vm6 = vcmp.gt.f32.partialorder %v4291_v16, %v4267_v11 }
 0x12d   : > { %3136 = vmatprep.subr.bf16.mxu0 %v3493_v30  ;;  %vm928_vm14 = vmand %vm845_vm13, %vm908_vm9  ;;  %v1068_v45 = vpack.c.bf16 %v2842_v40, %v2842_v40  ;;  %vm994_vm9 = vcmp.lt.f32.partialorder %v4253_v7, %v4357_v33  ;;  %v3519_v30 = vld [vmem:[%s4105_s19 + $0x270] sm:$0xff]   ;;  %v3525_v40 = vld [vmem:[%s4105_s19 + $0x2a0] sm:$0xff]  }
 0x12e   : > { %vm4384_vm12 = vmand %vm928_vm14, %vm990_vm0  ;;  %vm991_vm0 = vcmp.lt.f32.partialorder %v4285_v15, %v4276_v13 }
 0x12f   : > { %3270 = vmatpush3.bf16.msra.mxu1 %v3491_v31  ;;  %3137 = vmatpush3.bf16.msra.mxu0 %v3495_v32  ;;  %vm2939_vm10 = vmpackc.low %vm4384_vm12, %vm4384_vm12  ;;  %vm768_vm12 = vcmp.gt.f32.partialorder %v4202_v54, %v4297_v19  ;;  %v3521_v31 = vld [vmem:[%s4105_s19 + $0x2a8] sm:$0xff]   ;;  %v3564_v32 = vld [vmem:[%s4105_s19 + $0x300] sm:$0xff]  }
 0x130   : > { %3271 = vmatprep.subr.bf16.mxu1 %v3867_v41  ;;  %3138 = vmatprep.subr.bf16.mxu0 %v3497_v34  ;;  %vm846_vm13 = vmand %vm764_vm4, %vm826_vm2  ;;  %vm830_vm2 = vcmp.lt.f32.partialorder %v4196_v51, %v4319_v25  ;;  %vm913_vm4 = vcmp.gt.f32.partialorder %v4205_v55, %v4301_v20  ;;  %v3567_v34 = vld [vmem:[%s4105_s19 + $0x400] sm:$0xff]  }
 0x131   : > { %v4374_v37 = vpop.permute.xlu1 %754  ;;  %vm929_vm14 = vmand %vm846_vm13, %vm909_vm6  ;;  %vm995_vm13 = vcmp.lt.f32.partialorder %v4208_v56, %v4357_v33 }
 0x132   : > { %vm4425_vm6 = vmand %vm929_vm14, %vm991_vm0  ;;  %vm829_vm14 = vcmp.lt.f32.partialorder %v4238_v3, %v4319_v25 }
 0x133   : > { %3272 = vmatpush3.bf16.msra.mxu1 %v3494_v35  ;;  %3139 = vmatpush3.bf16.msra.mxu0 %v3499_v36  ;;  %v3518_v35 = vld [vmem:[%s4105_s19 + $0x130] sm:$0xff]   ;;  %v4507_v36 = vpop.permute.xlu0 %816 }
 0x134   : > { %3108 = vmatprep.subr.bf16.mxu1 %v3496_v38  ;;  %3140 = vmatprep.subr.bf16.mxu0 %v3501_v39  ;;  %v3520_v38 = vld [vmem:[%s4105_s19 + $0x168] sm:$0xff]  }
 0x135   : > { %v3523_v39 = vld [vmem:[%s4105_s19 + $0x268] sm:$0xff]  }
 0x136   : > { %v4393_v44 = vpop.permute.xlu1 %899  ;;  %3274 = vmatmul.mubr.msk.bf16.vlgmr.msra.gmra.mxu1 %vm4879_vm5, %v1068_v45  ;;  %vm767_vm5 = vcmp.gt.f32.partialorder %v4244_v6, %v4297_v19  ;;  %v3572_v45 = vld [vmem:[%s4105_s19 + $0x3d0] sm:$0xff]  }
 0x137   : > { %3109 = vmatpush3.bf16.msra.mxu1 %v3498_v43  ;;  %2940 = vmatprep.mubr.msk.bf16.mxu1 %vm2939_vm10, %v3868_v8  ;;  %vm850_vm10 = vmand %vm768_vm12, %vm830_vm2  ;;  %vm912_vm2 = vcmp.gt.f32.partialorder %v4259_v9, %v4301_v20 }
 0x138   : > { %3110 = vmatprep.subr.bf16.mxu1 %v3500_v46  ;;  %3141 = vmatpush3.bf16.msra.mxu0 %v3503_v47  ;;  %vm933_vm0 = vmand %vm850_vm10, %vm913_vm4  ;;  %v3522_v46 = vld [vmem:[%s4105_s19 + $0x128] sm:$0xff]   ;;  %v3524_v47 = vld [vmem:[%s4105_s19 + $0x160] sm:$0xff]  }
 0x139   : > { %3142 = vmatprep.subr.bf16.mxu0 %v3505_v48  ;;  %vm2945_vm12 = vmpackc.low %vm4425_vm6, %vm4425_vm6  ;;  %vm907_vm6 = vcmp.gt.f32.partialorder %v4259_v9, %v4267_v11  ;;  %v3527_v48 = vld [vmem:[%s4105_s19 + $0x260] sm:$0xff]  }
 0x13a   : > { %vm4444_vm1 = vmand %vm933_vm0, %vm995_vm13  ;;  %vm832_vm13 = vcmp.lt.f32.partialorder %v4214_v59, %v4319_v25 }
 0x13b   : > { %3111 = vmatpush3.bf16.msra.mxu1 %v3502_v49  ;;  %vm849_vm4 = vmand %vm767_vm5, %vm829_vm14  ;;  %vm915_vm5 = vcmp.gt.f32.partialorder %v4233_v1, %v4301_v20  ;;  %v4524_v43 = vpop.permute.xlu1 %981  ;;  %v4930_v49 = vmov 0 }
 0x13c   : > { %3112 = vmatprep.subr.bf16.mxu1 %v3504_v50  ;;  %3143 = vmatpush3.bf16.msra.mxu0 %v3507_v52  ;;  %vm932_vm10 = vmand %vm849_vm4, %vm912_vm2  ;;  %vm997_vm2 = vcmp.lt.f32.partialorder %v4230_v0, %v4357_v33  ;;  %vm824_vm4 = vcmp.lt.f32.partialorder %v4238_v3, %v4242_v5  ;;  %v4938_v50 = vmov 0  ;;  %v3549_v52 = vld [vmem:[%s4105_s19 + $0x320] sm:$0xff]  }
 0x13d   : > { %3144 = vmatprep.subr.bf16.mxu0 %v3509_v53  ;;  %vm4458_vm0 = vmand %vm932_vm10, %vm994_vm9  ;;  %vm762_vm9 = vcmp.gt.f32.partialorder %v4244_v6, %v4221_v62  ;;  %v3551_v53 = vld [vmem:[%s4105_s19 + $0x340] sm:$0xff]  }
 0x13e   : > { %vm2984_vm14 = vmpackc.low %vm4444_vm1, %vm4444_vm1 }
 0x13f   : > { %3113 = vmatpush3.bf16.msra.mxu1 %v3506_v58  ;;  %vm852_vm1 = vmand %vm770_vm3, %vm832_vm13 }
 0x140   : > { %3114 = vmatprep.subr.bf16.mxu1 %v3508_v61  ;;  %3145 = vmatpush3.bf16.msra.mxu0 %v3511_v4  ;;  %vm935_vm10 = vmand %vm852_vm1, %vm915_vm5  ;;  %vm838_vm5 = vcmp.lt.f32.partialorder %v4217_v60, %v4507_v36  ;;  %vm837_vm1 = vcmp.lt.f32.partialorder %v4214_v59, %v4507_v36  ;;  %v3528_v59 = vld [vmem:[%s4105_s19 + $0x298] sm:$0xff]   ;;  %v3550_v61 = vld [vmem:[%s4105_s19 + $0x2e0] sm:$0xff]  }
 0x141   : > { %3157 = vmatprep.subr.bf16.mxu0 %v3513_v12  ;;  %vm4487_vm7 = vmand %vm935_vm10, %vm997_vm2  ;;  %vm4928_vm2 = vcmp.gt.f32.partialorder %v4236_v2, %v4374_v37  ;;  %vm4929_vm10 = vcmp.gt.f32.partialorder %v4313_v23, %v4393_v44  ;;  %v3552_v4 = vld [vmem:[%s4105_s19 + $0x318] sm:$0xff]  }
 0x142   : > { %vm4494_vm3 = vmand %vm762_vm9, %vm824_vm4  ;;  %vm775_vm9 = vcmp.gt.f32.partialorder %v4227_v63, %v4374_v37  ;;  %v3555_v12 = vld [vmem:[%s4105_s19 + $0x418] sm:$0xff]   ;;  %v3583_v63 = vld [vmem:[%s4105_s19 + $0x3e0] sm:$0xff]  }
 0x143   : > { %3115 = vmatpush3.bf16.msra.mxu1 %v3510_v18  ;;  %2946 = vmatmul.mubr.msk.bf16.vlgmr.msra.gmra.mxu0 %vm2945_vm12, %v3868_v8  ;;  %vm851_vm12 = vmand %vm769_vm11, %vm831_vm8  ;;  %vm4923_vm11 = vcmp.lt.f32.partialorder %v4285_v15, %v4357_v33  ;;  %v3553_v18 = vld [vmem:[%s4105_s19 + $0x2d8] sm:$0xff]  }
 0x144   : > { %3116 = vmatprep.subr.bf16.mxu1 %v3512_v21  ;;  %3158 = vmatpush3.bf16.msra.mxu0 %v3515_v22  ;;  %vm934_vm13 = vmand %vm851_vm12, %vm914_vm15  ;;  %vm1003_vm15 = vcmp.lt.f32.partialorder %v4331_v26, %v4524_v43  ;;  %vm828_vm12 = vcmp.lt.f32.partialorder %v4217_v60, %v4242_v5  ;;  %v3556_v21 = vld [vmem:[%s4105_s19 + $0x310] sm:$0xff]   ;;  %v3581_v5 = vld [vmem:[%s4105_s19 + $0x380] sm:$0xff]  }
 0x145   : > { %3159 = vmatprep.subr.bf16.mxu0 %v3517_v24  ;;  %2985 = vmatprep.mubr.msk.bf16.mxu0 %vm2984_vm14, %v3868_v8  ;;  %vm4520_vm8 = vmand %vm934_vm13, %vm4923_vm11  ;;  %vm766_vm13 = vcmp.gt.f32.partialorder %v4236_v2, %v4221_v62  ;;  %vm1002_vm11 = vcmp.lt.f32.partialorder %v4230_v0, %v4524_v43  ;;  %v3526_v62 = vld [vmem:[%s4105_s19 + $0x120] sm:$0xff]   ;;  %v3559_v22 = vld [vmem:[%s4105_s19 + $0x410] sm:$0xff]  }
 0x146   : > { %v4925_v42 = vsel %vm4520_vm8, 4294967295, %v4924_v42  ;;  %vm4528_vm14 = vmand %vm4494_vm3, %vm907_vm6  ;;  %vm920_vm6 = vcmp.gt.f32.partialorder %v4233_v1, %v4393_v44  ;;  %v3530_v1 = vld [vmem:[%s4105_s19 + $0x258] sm:$0xff]   ;;  %v3562_v24 = vld [vmem:[%s4105_s19 + $0x448] sm:$0xff]  }
 0x147   : > { %3117 = vmatpush3.bf16.msra.mxu1 %v3514_v28  ;;  %vm858_vm4 = vmand %vm4928_vm2, %vm838_vm5  ;;  %vm989_vm2 = vcmp.lt.f32.partialorder %v4253_v7, %v4276_v13  ;;  %v3560_v28 = vld [vmem:[%s4105_s19 + $0x308] sm:$0xff]  }
 0x148   : > { %3118 = vmatprep.subr.bf16.mxu1 %v3516_v29  ;;  %3160 = vmatpush3.bf16.msra.mxu0 %v3519_v30  ;;  %vm941_vm3 = vmand %vm858_vm4, %vm4929_vm10  ;;  %vm836_vm10 = vcmp.lt.f32.partialorder %v4263_v10, %v4507_v36  ;;  %v3531_v10 = vld [vmem:[%s4105_s19 + $0x290] sm:$0xff]   ;;  %v3563_v29 = vld [vmem:[%s4105_s19 + $0x408] sm:$0xff]  }
 0x149   : > { %3161 = vmatprep.subr.bf16.mxu0 %v3521_v31  ;;  %vm4557_vm5 = vmand %vm941_vm3, %vm1003_vm15  ;;  %vm774_vm15 = vcmp.gt.f32.partialorder %v4278_v14, %v4374_v37  ;;  %v3529_v14 = vld [vmem:[%s4105_s19 + $0x238] sm:$0xff]   ;;  %v3566_v30 = vld [vmem:[%s4105_s19 + $0x440] sm:$0xff]  }
 0x14a   : > { %v4931_v49 = vsel %vm4557_vm5, 4294967295, %v4930_v49  ;;  %vm857_vm4 = vmand %vm775_vm9, %vm837_vm1  ;;  %vm919_vm9 = vcmp.gt.f32.partialorder %v4291_v16, %v4393_v44  ;;  %v3533_v16 = vld [vmem:[%s4105_s19 + $0x250] sm:$0xff]   ;;  %v3561_v31 = vld [vmem:[%s4105_s19 + $0x2c8] sm:$0xff]  }
 0x14b   : > { %3119 = vmatpush3.bf16.msra.mxu1 %v3518_v35  ;;  %vm940_vm3 = vmand %vm857_vm4, %vm920_vm6  ;;  %vm1001_vm6 = vcmp.lt.f32.partialorder %v4285_v15, %v4524_v43  ;;  %vm918_vm4 = vcmp.gt.f32.partialorder %v4205_v55, %v4393_v44  ;;  %v3536_v55 = vld [vmem:[%s4105_s19 + $0x248] sm:$0xff]   ;;  %v3542_v15 = vld [vmem:[%s4105_s19 + $0x358] sm:$0xff]  }
 0x14c   : > { %3120 = vmatprep.subr.bf16.mxu1 %v3520_v38  ;;  %3162 = vmatpush3.bf16.msra.mxu0 %v3523_v39  ;;  %vm4573_vm5 = vmand %vm766_vm13, %vm828_vm12  ;;  %v3570_v35 = vld [vmem:[%s4105_s19 + $0x438] sm:$0xff]   ;;  %v3577_v0 = vld [vmem:[%s4105_s19 + $0x388] sm:$0xff]  }
 0x14d   : > { %3163 = vmatprep.subr.bf16.mxu0 %v3525_v40  ;;  %vm4578_vm8 = vmand %vm940_vm3, %vm1002_vm11  ;;  %vm773_vm11 = vcmp.gt.f32.partialorder %v4202_v54, %v4374_v37  ;;  %v3534_v54 = vld [vmem:[%s4105_s19 + $0x288] sm:$0xff]   ;;  %vm911_vm3 = vcmp.gt.f32.partialorder %v4313_v23, %v4267_v11  ;;  %v3568_v38 = vld [vmem:[%s4105_s19 + $0x3d8] sm:$0xff]  }
 0x14e   : > { %vm4586_vm1 = vmand %vm4528_vm14, %vm989_vm2  ;;  %vm835_vm14 = vcmp.lt.f32.partialorder %v4196_v51, %v4507_v36  ;;  %v3532_v51 = vld [vmem:[%s4105_s19 + $0x230] sm:$0xff]   ;;  %v3571_v39 = vld [vmem:[%s4105_s19 + $0x3f8] sm:$0xff]  }
 0x14f   : > { %3121 = vmatpush3.bf16.msra.mxu1 %v3522_v46  ;;  %vm856_vm12 = vmand %vm774_vm15, %vm836_vm10  ;;  %vm1000_vm10 = vcmp.lt.f32.partialorder %v4208_v56, %v4524_v43  ;;  %v3574_v40 = vld [vmem:[%s4105_s19 + $0x430] sm:$0xff]   ;;  %v3591_v56 = vld [vmem:[%s4105_s19 + $0x360] sm:$0xff]  }
 0x150   : > { %3122 = vmatprep.subr.bf16.mxu1 %v3524_v47  ;;  %3164 = vmatpush3.bf16.msra.mxu0 %v3527_v48  ;;  %vm939_vm13 = vmand %vm856_vm12, %vm919_vm9  ;;  %vm834_vm12 = vcmp.lt.f32.partialorder %v4238_v3, %v4507_v36  ;;  %v3535_v3 = vld [vmem:[%s4105_s19 + $0x228] sm:$0xff]   ;;  %v3565_v36 = vld [vmem:[%s4105_s19 + $0x2c0] sm:$0xff]  }
 0x151   : > { %3165 = vmatprep.subr.bf16.mxu0 %v3528_v59  ;;  %vm4600_vm2 = vmand %vm939_vm13, %vm1001_vm6  ;;  %vm4940_vm6 = vmmov 0   ;;  %v3575_v46 = vld [vmem:[%s4105_s19 + $0x3f0] sm:$0xff]   ;;  %v3578_v47 = vld [vmem:[%s4105_s19 + $0x428] sm:$0xff]  }
 0x152   : > { %v4939_v50 = vsel %vm4600_vm2, 4294967295, %v4938_v50  ;;  %vm2941_vm15 = vmpackc.low %vm4586_vm1, %vm4586_vm1  ;;  %vm772_vm1 = vcmp.gt.f32.partialorder %v4244_v6, %v4374_v37  ;;  %v3537_v6 = vld [vmem:[%s4105_s19 + $0x280] sm:$0xff]   ;;  %vm993_vm2 = vcmp.lt.f32.partialorder %v4331_v26, %v4276_v13  ;;  %v3540_v13 = vld [vmem:[%s4105_s19 + $0x338] sm:$0xff]  }
 0x153   : > { %3123 = vmatpush3.bf16.msra.mxu1 %v3526_v62  ;;  %vm855_vm9 = vmand %vm773_vm11, %vm835_vm14  ;;  %vm917_vm11 = vcmp.gt.f32.partialorder %v4259_v9, %v4393_v44  ;;  %v3539_v9 = vld [vmem:[%s4105_s19 + $0x240] sm:$0xff]   ;;  %v3548_v44 = vld [vmem:[%s4105_s19 + $0x348] sm:$0xff]  }
 0x154   : > { %3277 = vmatprep.subr.bf16.mxu1 %v3867_v41  ;;  %3166 = vmatpush3.bf16.msra.mxu0 %v3530_v1  ;;  %vm938_vm13 = vmand %vm855_vm9, %vm918_vm4  ;;  %vm999_vm4 = vcmp.lt.f32.partialorder %v4253_v7, %v4524_v43  ;;  %v3538_v7 = vld [vmem:[%s4105_s19 + $0x220] sm:$0xff]   ;;  %v3569_v43 = vld [vmem:[%s4105_s19 + $0x398] sm:$0xff]  }
 0x155   : > { %3167 = vmatprep.subr.bf16.mxu0 %v3531_v10  ;;  %vm931_vm14 = vmand %vm4573_vm5, %vm911_vm3  ;;  %v3573_v48 = vld [vmem:[%s4105_s19 + $0x390] sm:$0xff]   ;;  %v3576_v59 = vld [vmem:[%s4105_s19 + $0x3c8] sm:$0xff]  }
 0x156   : > { %2942 = vmatmul.mubr.msk.bf16.vlgmr.msra.gmra.mxu1 %vm2941_vm15, %v3868_v8  ;;  %vm4624_vm15 = vmand %vm938_vm13, %vm1000_vm10  ;;  %v3579_v62 = vld [vmem:[%s4105_s19 + $0x3e8] sm:$0xff]   ;;  %v3580_v1 = vld [vmem:[%s4105_s19 + $0x3c0] sm:$0xff]  }
 0x157   : > { %3278 = vmatpush3.bf16.msra.mxu1 %v3529_v14  ;;  %3285 = vmatprep.mubr.msk.bf16.mxu1 %vm4940_vm6, %v3867_v41  ;;  %vm854_vm9 = vmand %vm772_vm1, %vm834_vm12  ;;  %vm771_vm1 = vcmp.gt.f32.partialorder %v4236_v2, %v4297_v19  ;;  %vm833_vm12 = vcmp.lt.f32.partialorder %v4217_v60, %v4319_v25  ;;  %v3541_v60 = vld [vmem:[%s4105_s19 + $0x2f8] sm:$0xff]   ;;  %v3543_v19 = vld [vmem:[%s4105_s19 + $0x330] sm:$0xff]  }
 0x158   : > { %3279 = vmatprep.subr.bf16.mxu1 %v3867_v41  ;;  %3168 = vmatpush3.bf16.msra.mxu0 %v3533_v16  ;;  %vm937_vm10 = vmand %vm854_vm9, %vm917_vm11  ;;  %vm916_vm11 = vcmp.gt.f32.partialorder %v4313_v23, %v4301_v20  ;;  %v3545_v25 = vld [vmem:[%s4105_s19 + $0x350] sm:$0xff]   ;;  %vm4945_vm9 = vcmask 523264   ;;  %v3546_v23 = vld [vmem:[%s4105_s19 + $0x328] sm:$0xff]  }
 0x159   : > { %3169 = vmatprep.subr.bf16.mxu0 %v3534_v54  ;;  %vm4640_vm5 = vmand %vm937_vm10, %vm999_vm4  ;;  %vm998_vm4 = vcmp.lt.f32.partialorder %v4331_v26, %v4357_v33  ;;  %v3544_v20 = vld [vmem:[%s4105_s19 + $0x2f0] sm:$0xff]   ;;  %v3547_v26 = vld [vmem:[%s4105_s19 + $0x2e8] sm:$0xff]  }
 0x15a   : > { %vm1013_vm3 = vmand %vm931_vm14, %vm993_vm2  ;;  %v3584_v10 = vld [vmem:[%s4105_s19 + $0x3b8] sm:$0xff]   ;;  %v3586_v16 = vld [vmem:[%s4105_s19 + $0x3b0] sm:$0xff]  }
 0x15b   : > { %3280 = vmatpush3.bf16.msra.mxu1 %v3532_v51  ;;  %vm2986_vm13 = vmpackc.low %vm4458_vm0, %vm4458_vm0  ;;  %v2847_v37 = vsel %vm1013_vm3, 1.0, %v3867_v41  ;;  %v3585_v14 = vld [vmem:[%s4105_s19 + $0x378] sm:$0xff]   ;;  %v3587_v54 = vld [vmem:[%s4105_s19 + $0x370] sm:$0xff]  }
 0x15c   : > { %3281 = vmatprep.subr.bf16.mxu1 %v3867_v41  ;;  %3170 = vmatpush3.bf16.msra.mxu0 %v3536_v55  ;;  %vm853_vm2 = vmand %vm771_vm1, %vm833_vm12  ;;  %v1073_v2 = vpack.c.bf16 %v2847_v37, %v2847_v37  ;;  %vm4947_vm1 = vnez %v4925_v42  ;;  %v3582_v42 = vld [vmem:[%s4105_s19 + $0x420] sm:$0xff]   ;;  %v3588_v51 = vld [vmem:[%s4105_s19 + $0x3a8] sm:$0xff]  }
 0x15d   : > { %3171 = vmatprep.subr.bf16.mxu0 %v3537_v6  ;;  %vm2988_vm0 = vmpackc.low %vm4487_vm7, %vm4487_vm7  ;;  %v3589_v55 = vld [vmem:[%s4105_s19 + $0x368] sm:$0xff]   ;;  %v3592_v6 = vld [vmem:[%s4105_s19 + $0x478] sm:$0xff]  }
 0x15e   : > { %vm936_vm14 = vmand %vm853_vm2, %vm916_vm11 }
 0x15f   : > { %3282 = vmatpush3.bf16.msra.mxu1 %v3535_v3  ;;  %vm1018_vm7 = vmand %vm936_vm14, %vm998_vm4  ;;  %v3593_v3 = vld [vmem:[%s4105_s19 + $0x470] sm:$0xff]  }
 0x160   : > { %3283 = vmatprep.subr.bf16.mxu1 %v3867_v41  ;;  %3172 = vmatpush3.bf16.msra.mxu0 %v3539_v9  ;;  %v2852_v33 = vsel %vm1018_vm7, 1.0, %v3867_v41  ;;  %vm3033_vm10 = vmpackc.low %vm4578_vm8, %vm4578_vm8  ;;  %v3594_v9 = vld [vmem:[%s4105_s19 + $0x468] sm:$0xff]  }
 0x161   : > { %3289 = vmatprep.subr.bf16.mxu0 %v3867_v41  ;;  %v1078_v58 = vpack.c.bf16 %v2852_v33, %v2852_v33  ;;  %vm4946_vm3 = vmmov %vm4945_vm9 }
 0x162   : > { %vm3029_vm8 = vmpackc.low %vm4624_vm15, %vm4624_vm15  ;;  %vm4948_vm15 = vnez %v4939_v50  ;;  %v3590_v50 = vld [vmem:[%s4105_s19 + $0x3a0] sm:$0xff]  }
 0x163   : > { %3284 = vmatpush3.bf16.msra.mxu1 %v3538_v7  ;;  %2987 = vmatmul.mubr.msk.bf16.vlgmr.msra.gmra.mxu0 %vm2986_vm13, %v3868_v8  ;;  %vm2990_vm12 = vmpackc.low %vm4947_vm1, %vm4947_vm1  ;;  %v3595_v7 = vld [vmem:[%s4105_s19 + $0x460] sm:$0xff]   ;;  %s3870_s19 = smov [#allocation11]  }
 0x164   : > { %3179 = vmatprep.subr.bf16.mxu1 %v3540_v13  ;;  %3290 = vmatpush3.bf16.msra.mxu0 %v3542_v15  ;;  %vm3035_vm13 = vmpackc.low %vm4948_vm15, %vm4948_vm15  ;;  %s3750_s5 = sshll.u32 %s3870_s19, 4  ;;  %s3751_s5 = int_to_ptr.vmem [resolvable:$false] %s3750_s5 }
 0x165   : > { %3291 = vmatprep.subr.bf16.mxu0 %v3867_v41  ;;  %3297 = vmatprep.mubr.msk.bf16.mxu0 %vm4940_vm6, %v3867_v41  ;;  %vm3031_vm2 = vmpackc.low %vm4640_vm5, %vm4640_vm5  ;;  %vm4949_vm5 = vnez %v4931_v49  ;;  %s3752_s11 = scalar_lea.vmem %s3751_s5, 1024  ;;  %p3753_p8 = scmp.lt.s32.totalorder %s4774_s4, %s3751_s5 }
 0x166   : > { %3286 = vmatmul.mubr.msk.bf16.vlgmr.msra.gmra.mxu1 %vm4945_vm9, %v1073_v2  ;;  %v2857_v11 = vsel %vm4949_vm5, 1.0, %v3867_v41  ;;  %vm4950_vm11 = vmmov %vm4946_vm3  ;;  %p3754_p3 = scmp.lt.s32.totalorder %s3752_s11, %s3746_s21 }
 0x167   : > { %3180 = vmatpush3.bf16.msra.mxu1 %v3541_v60  ;;  %2989 = vmatprep.mubr.msk.bf16.mxu1 %vm2988_vm0, %v3868_v8 }
 0x168   : > { %3181 = vmatprep.subr.bf16.mxu1 %v3543_v19  ;;  %3292 = vmatpush3.bf16.msra.mxu0 %v3545_v25  ;;  %p3755_p5 = por %p3754_p3, %p3753_p8 }
 0x169   : > { %3293 = vmatprep.subr.bf16.mxu0 %v3867_v41 }
 0x16a   : > { %p3756_p4 = pnand %p3755_p5, %p3749_p9 }
 0x16b   : > { %3182 = vmatpush3.bf16.msra.mxu1 %v3544_v20 }
 0x16c   : > { %3183 = vmatprep.subr.bf16.mxu1 %v3546_v23  ;;  %3294 = vmatpush3.bf16.msra.mxu0 %v3548_v44 }
 0x16d   : > { %3295 = vmatprep.subr.bf16.mxu0 %v3867_v41 }
 0x16f   : > { %3184 = vmatpush3.bf16.msra.mxu1 %v3547_v26 }
 0x170   : > { %3185 = vmatprep.subr.bf16.mxu1 %v3549_v52  ;;  %3296 = vmatpush3.bf16.msra.mxu0 %v3551_v53 }
 0x171   : > { %3228 = vmatprep.subr.bf16.mxu0 %v3554_v57 }
 0x173   : > { %3186 = vmatpush3.bf16.msra.mxu1 %v3550_v61  ;;  %3298 = vmatmul.mubr.msk.bf16.vlgmr.msra.gmra.mxu0 %vm4946_vm3, %v1078_v58 }
 0x174   : > { %3187 = vmatprep.subr.bf16.mxu1 %v3552_v4  ;;  %3229 = vmatpush3.bf16.msra.mxu0 %v3555_v12 }
 0x175   : > { %3230 = vmatprep.subr.bf16.mxu0 %v3558_v17  ;;  %3034 = vmatprep.mubr.msk.bf16.mxu0 %vm3033_vm10, %v3868_v8 }
 0x177   : > { %3188 = vmatpush3.bf16.msra.mxu1 %v3553_v18 }
 0x178   : > { %3189 = vmatprep.subr.bf16.mxu1 %v3556_v21  ;;  %3231 = vmatpush3.bf16.msra.mxu0 %v3559_v22 }
 0x179   : > { %3232 = vmatprep.subr.bf16.mxu0 %v3562_v24 }
 0x17b   : > { %3190 = vmatpush3.bf16.msra.mxu1 %v3557_v27 }
 0x17c   : > { %3191 = vmatprep.subr.bf16.mxu1 %v3560_v28  ;;  %3233 = vmatpush3.bf16.msra.mxu0 %v3563_v29 }
 0x17d   : > { %3234 = vmatprep.subr.bf16.mxu0 %v3566_v30 }
 0x17f   : > { %3192 = vmatpush3.bf16.msra.mxu1 %v3561_v31 }
 0x180   : > { %3193 = vmatprep.subr.bf16.mxu1 %v3564_v32  ;;  %3235 = vmatpush3.bf16.msra.mxu0 %v3567_v34 }
 0x181   : > { %3236 = vmatprep.subr.bf16.mxu0 %v3570_v35 }
 0x183   : > { %3194 = vmatpush3.bf16.msra.mxu1 %v3565_v36 }
 0x184   : > { %3206 = vmatprep.subr.bf16.mxu1 %v3568_v38  ;;  %3237 = vmatpush3.bf16.msra.mxu0 %v3571_v39 }
 0x185   : > { %3238 = vmatprep.subr.bf16.mxu0 %v3574_v40 }
 0x186   : > { %2991 = vmatmul.mubr.msk.bf16.vlgmr.msra.gmra.mxu1 %vm2990_vm12, %v3868_v8 }
 0x187   : > { %3207 = vmatpush3.bf16.msra.mxu1 %v3569_v43  ;;  %3030 = vmatprep.mubr.msk.bf16.mxu1 %vm3029_vm8, %v3868_v8 }
 0x188   : > { %3208 = vmatprep.subr.bf16.mxu1 %v3572_v45  ;;  %3239 = vmatpush3.bf16.msra.mxu0 %v3575_v46 }
 0x189   : > { %3240 = vmatprep.subr.bf16.mxu0 %v3578_v47 }
 0x18b   : > { %3209 = vmatpush3.bf16.msra.mxu1 %v3573_v48 }
 0x18c   : > { %3210 = vmatprep.subr.bf16.mxu1 %v3576_v59  ;;  %3241 = vmatpush3.bf16.msra.mxu0 %v3579_v62 }
 0x18d   : > { %3242 = vmatprep.subr.bf16.mxu0 %v3582_v42 }
 0x18f   : > { %3211 = vmatpush3.bf16.msra.mxu1 %v3577_v0 }
 0x190   : > { %3212 = vmatprep.subr.bf16.mxu1 %v3580_v1  ;;  %3243 = vmatpush3.bf16.msra.mxu0 %v3583_v63 }
 0x193   : > { %3213 = vmatpush3.bf16.msra.mxu1 %v3581_v5  ;;  %3036 = vmatmul.mubr.msk.bf16.vlgmr.msra.gmra.mxu0 %vm3035_vm13, %v3868_v8 }
 0x194   : > { %3214 = vmatprep.subr.bf16.mxu1 %v3584_v10 }
 0x197   : > { %3215 = vmatpush3.bf16.msra.mxu1 %v3585_v14 }
 0x198   : > { %3216 = vmatprep.subr.bf16.mxu1 %v3586_v16 }
 0x19b   : > { %3217 = vmatpush3.bf16.msra.mxu1 %v3587_v54 }
 0x19c   : > { %3218 = vmatprep.subr.bf16.mxu1 %v3588_v51 }
 0x19f   : > { %3219 = vmatpush3.bf16.msra.mxu1 %v3589_v55  ;;  %v3596_v55 = vld [vmem:[#allocation8 + $0x38] sm:$0xff]  }
 0x1a0   : > { %3220 = vmatprep.subr.bf16.mxu1 %v3590_v50  ;;  %v3597_v50 = vld [vmem:[#allocation8 + $0x30] sm:$0xff]   ;;  %3313 = vmatprep.subr.bf16.mxu0 %v3596_v55 }
 0x1a1   : > { %3314 = vmatpush3.bf16.msra.mxu0 %v3596_v55 }
 0x1a2   : > { %3315 = vmatprep.subr.bf16.mxu0 %v3597_v50 }
 0x1a3   : > { %3221 = vmatpush3.bf16.msra.mxu1 %v3591_v56  ;;  %v3598_v56 = vld [vmem:[#allocation8 + $0x28] sm:$0xff]  }
 0x1a4   : > { %3301 = vmatprep.subr.bf16.mxu1 %v3867_v41 }
 0x1a5   : > { %3316 = vmatpush3.bf16.msra.mxu0 %v3597_v50 }
 0x1a6   : > { %3032 = vmatmul.mubr.msk.bf16.vlgmr.msra.gmra.mxu1 %vm3031_vm2, %v3868_v8  ;;  %v1083_v8 = vpack.c.bf16 %v2857_v11, %v2857_v11  ;;  %3317 = vmatprep.subr.bf16.mxu0 %v3598_v56 }
 0x1a7   : > { %3302 = vmatpush3.bf16.msra.mxu1 %v3592_v6  ;;  %3309 = vmatprep.mubr.msk.bf16.mxu1 %vm4940_vm6, %v3867_v41 }
 0x1a8   : > { %3303 = vmatprep.subr.bf16.mxu1 %v3867_v41 }
 0x1a9   : > { %3318 = vmatpush3.bf16.msra.mxu0 %v3598_v56 }
 0x1ab   : > { %3304 = vmatpush3.bf16.msra.mxu1 %v3593_v3 }
 0x1ac   : > { %3305 = vmatprep.subr.bf16.mxu1 %v3867_v41 }
 0x1af   : > { %3306 = vmatpush3.bf16.msra.mxu1 %v3594_v9 }
 0x1b0   : > { %3307 = vmatprep.subr.bf16.mxu1 %v3867_v41 }
 0x1b3   : > { %3308 = vmatpush3.bf16.msra.mxu1 %v3595_v7 }
 0x1b6   : > { %3310 = vmatmul.mubr.msk.bf16.vlgmr.msra.gmra.mxu1 %vm4950_vm11, %v1083_v8 }
 0x1e2   : > { %v3075_v13 = vpop.f32.mrf.mxu0 }
 0x1e4   : > { %v3076_v15 = vpop.f32.mrf.mxu0 }
 0x1e5   : > { %v3077_v23 = vadd.f32 %v3076_v15, %v3075_v13 }
 0x1e6   : > { %v3097_v37 = vpop.f32.mrf.mxu1  ;;  %v3078_v60 = vpop.f32.mrf.mxu0 }
 0x1e8   : > { %v3098_v2 = vpop.f32.mrf.mxu1  ;;  %v3079_v19 = vpop.f32.mrf.mxu0 }
 0x1e9   : > { %v3099_v44 = vadd.f32 %v3098_v2, %v3097_v37 }
 0x1ea   : > { %v3100_v25 = vpop.f32.mrf.mxu1 }
 0x1eb   : > { %v1379_v26 = vadd.f32 %v3099_v44, %v3077_v23  ;;  %v3599_v44 = vld [vmem:[#allocation8 + $0x20] sm:$0xff]  }
 0x1ec   : > { %v3101_v20 = vpop.f32.mrf.mxu1  ;;  %3319 = vmatprep.subr.bf16.mxu0 %v3599_v44 }
 0x1ed   : > { %3320 = vmatpush3.bf16.msra.mxu0 %v3599_v44 }
 0x1f6   : > { %v1418_v33 = vpop.f32.mrf.mxu1 }
 0x1f7   : > { %v4758_v52 = vadd.f32 %v1418_v33, %v1379_v26  ;;  %v3600_v26 = vld [vmem:[#allocation8 + $0x18] sm:$0xff]   ;;  %v3601_v33 = vld [vmem:[#allocation8 + $0x10] sm:$0xff]  }
 0x1f8   : > { %v3275_v49 = vpop.f32.mrf.mxu1  ;;  %3321 = vmatprep.subr.bf16.mxu0 %v3600_v26 }
 0x1f9   : > { %v2441_v41 = vmul.f32 %v4758_v52, %v4758_v52  ;;  %3322 = vmatpush3.bf16.msra.mxu0 %v3600_v26  ;;  %v3602_v49 = vld [vmem:[#allocation8 + $0x8] sm:$0xff]  }
 0x1fa   : > { %v1421_v53 = vpop.f32.mrf.mxu1  ;;  %3323 = vmatprep.subr.bf16.mxu0 %v3601_v33 }
 0x1fb   : > { %2445 = vadd.xlane.f32.xlu0 %v2441_v41  ;;  %v3603_v41 = vld [vmem:[#allocation8] sm:$0xff]  }
 0x1fc   : > { %v3276_v57 = vpop.f32.mrf.mxu1 }
 0x1fd   : > { %3324 = vmatpush3.bf16.msra.mxu0 %v3601_v33 }
 0x1fe   : > { %3325 = vmatprep.subr.bf16.mxu0 %v3602_v49 }
 0x201   : > { %3326 = vmatpush3.bf16.msra.mxu0 %v3602_v49 }
 0x202   : > { %3327 = vmatprep.subr.bf16.mxu0 %v3603_v41 }
 0x203   : > { %v3146_v58 = vpop.f32.mrf.mxu0 }
 0x205   : > { %v3147_v61 = vpop.f32.mrf.mxu0  ;;  %3328 = vmatpush3.bf16.msra.mxu0 %v3603_v41 }
 0x206   : > { %v3148_v27 = vadd.f32 %v3147_v61, %v3146_v58 }
 0x207   : > { %v3149_v4 = vpop.f32.mrf.mxu0 }
 0x209   : > { %v3150_v12 = vpop.f32.mrf.mxu0 }
 0x216   : > { %v3124_v17 = vpop.f32.mrf.mxu1 }
 0x218   : > { %v3125_v18 = vpop.f32.mrf.mxu1 }
 0x219   : > { %v3126_v24 = vadd.f32 %v3125_v18, %v3124_v17 }
 0x21a   : > { %v3127_v21 = vpop.f32.mrf.mxu1 }
 0x21b   : > { %v1718_v29 = vadd.f32 %v3148_v27, %v3126_v24 }
 0x21c   : > { %v3128_v22 = vpop.f32.mrf.mxu1 }
 0x223   : > { %v3173_v28 = vpop.f32.mrf.mxu0 }
 0x225   : > { %v3174_v30 = vpop.f32.mrf.mxu0 }
 0x226   : > { %v1757_v31 = vpop.f32.mrf.mxu1  ;;  %v3175_v62 = vadd.f32 %v3174_v30, %v3173_v28 }
 0x227   : > { %v4762_v32 = vadd.f32 %v1757_v31, %v1718_v29  ;;  %v3176_v34 = vpop.f32.mrf.mxu0 }
 0x228   : > { %v3287_v35 = vpop.f32.mrf.mxu1 }
 0x229   : > { %v2442_v36 = vmul.f32 %v4762_v32, %v4762_v32  ;;  %v3177_v38 = vpop.f32.mrf.mxu0 }
 0x22a   : > { %v1760_v39 = vpop.f32.mrf.mxu1 }
 0x22b   : > { %2447 = vadd.xlane.f32.xlu1 %v2442_v36 }
 0x22c   : > { %v3288_v40 = vpop.f32.mrf.mxu1 }
 0x233   : > { %v2096_v43 = vpop.f32.mrf.mxu0 }
 0x235   : > { %v3299_v45 = vpop.f32.mrf.mxu0 }
 0x237   : > { %v2099_v46 = vpop.f32.mrf.mxu0 }
 0x239   : > { %v3300_v47 = vpop.f32.mrf.mxu0 }
 0x246   : > { %v3195_v48 = vpop.f32.mrf.mxu1 }
 0x248   : > { %v3196_v59 = vpop.f32.mrf.mxu1 }
 0x249   : > { %v3197_v42 = vadd.f32 %v3196_v59, %v3195_v48 }
 0x24a   : > { %v3198_v0 = vpop.f32.mrf.mxu1 }
 0x24b   : > { %v2057_v1 = vadd.f32 %v3197_v42, %v3175_v62 }
 0x24c   : > { %v3199_v63 = vpop.f32.mrf.mxu1 }
 0x24d   : > { %v4766_v5 = vadd.f32 %v2096_v43, %v2057_v1 }
 0x24f   : > { %v2443_v10 = vmul.f32 %v4766_v5, %v4766_v5 }
 0x251   : > { %2449 = vadd.xlane.f32.xlu0 %v2443_v10 }
 0x253   : > { %v3244_v14 = vpop.f32.mrf.mxu0 }
 0x255   : > { %v3245_v16 = vpop.f32.mrf.mxu0 }
 0x256   : > { %v3246_v8 = vadd.f32 %v3245_v16, %v3244_v14 }
 0x257   : > { %v3247_v54 = vpop.f32.mrf.mxu0 }
 0x259   : > { %v3248_v51 = vpop.f32.mrf.mxu0 }
 0x266   : > { %v3222_v6 = vpop.f32.mrf.mxu1 }
 0x268   : > { %v3223_v3 = vpop.f32.mrf.mxu1 }
 0x269   : > { %v3224_v11 = vadd.f32 %v3223_v3, %v3222_v6 }
 0x26a   : > { %v3225_v9 = vpop.f32.mrf.mxu1 }
 0x26b   : > { %v2396_v13 = vadd.f32 %v3246_v8, %v3224_v11 }
 0x26c   : > { %v3226_v7 = vpop.f32.mrf.mxu1 }
 0x276   : > { %v2435_v15 = vpop.f32.mrf.mxu1 }
 0x277   : > { %v2436_v37 = vadd.f32 %v2435_v15, %v2396_v13 }
 0x278   : > { %v3311_v60 = vpop.f32.mrf.mxu1 }
 0x279   : > { %v2444_v2 = vmul.f32 %v2436_v37, %v2436_v37 }
 0x27a   : > { %v2438_v19 = vpop.f32.mrf.mxu1 }
 0x27b   : > { %2451 = vadd.xlane.f32.xlu0 %v2444_v2 }
 0x27c   : > { %v3312_v25 = vpop.f32.mrf.mxu1 }
 0x284   : > { %v2446_v20 = vpop.xlane.xlu0 %2445 }
 0x285   : > { %v2453_v23 = vmax.f32 %v2446_v20, 1e-24 }
 0x287   : > { %3604 = vrsqrt.f32 %v2453_v23 }
 0x294   : > { %v3605_v53 = vpop.eup %3604 }
 0x295   : > { %v2461_v57 = vmul.f32 %v3605_v53, %v4758_v52 }
 0x297   : > { %2465 = vst [vmem:[%s396_s0] sm:$0xff] %v2461_v57 }
 0x2b4   : > { %v2448_v58 = vpop.xlane.xlu1 %2447 }
 0x2b5   : > { %v2454_v61 = vmax.f32 %v2448_v58, 1e-24 }
 0x2b7   : > { %3606 = vrsqrt.f32 %v2454_v61 }
 0x2c4   : > { %v3607_v4 = vpop.eup %3606 }
 0x2c5   : > { %v2462_v12 = vmul.f32 %v3607_v4, %v4762_v32 }
 0x2c7   : > { %2466 = vst [vmem:[%s396_s0 + $0x8] sm:$0xff] %v2462_v12  ;;  %v2469_v17 = vpack.c.bf16 %v2462_v12, %v2461_v57 }
 0x2c9   : > { %3329 = vmatprep.mubr.bf16.mxu0 %v2469_v17 }
 0x2da   : > { %v2450_v18 = vpop.xlane.xlu0 %2449 }
 0x2db   : > { %v2455_v21 = vmax.f32 %v2450_v18, 1e-24 }
 0x2dd   : > { %3608 = vrsqrt.f32 %v2455_v21 }
 0x2ea   : > { %v3609_v52 = vpop.eup %3608 }
 0x2eb   : > { %v2463_v22 = vmul.f32 %v3609_v52, %v4766_v5 }
 0x2ed   : > { %2467 = vst [vmem:[%s396_s0 + $0x10] sm:$0xff] %v2463_v22 }
 0x304   : > { %v2452_v24 = vpop.xlane.xlu0 %2451 }
 0x305   : > { %v2456_v27 = vmax.f32 %v2452_v24, 1e-24 }
 0x307   : > { %3610 = vrsqrt.f32 %v2456_v27 }
 0x314   : > { %v3611_v28 = vpop.eup %3610 }
 0x315   : > { %v2464_v29 = vmul.f32 %v3611_v28, %v2436_v37 }
 0x317   : > { %2468 = vst [vmem:[%s396_s0 + $0x18] sm:$0xff] %v2464_v29  ;;  %v2470_v30 = vpack.c.bf16 %v2464_v29, %v2463_v22 }
 0x319   : > { %3330 = vmatmul.mubr.bf16.vlgmr.msra.gmra.mxu0 %v2470_v30 }
 0x31a   : > { %3759 = shalt.err (!%p3756_p4)
}
 0x31b   : > { %s3760_s16 = scalar_lea.hbm %s4782_s20, 512  ;;  %s3764_s15 = scalar_lea.hbm %s4872_s6, 1024 }
 0x31c   : > { %p3761_p12 = scmp.ne.s32.totalorder %s4782_s20, %s3760_s16  ;;  %p3765_p10 = scmp.lt.s32.totalorder %s4782_s20, %s4872_s6 }
 0x31d   : > { %p3766_p13 = scmp.lt.s32.totalorder %s3764_s15, %s3760_s16 }
 0x31e   : > { %p3762_p11 = pnand %p3761_p12, %p4011_p1 }
 0x31f   : > { %p3767_p0 = por %p3766_p13, %p3765_p10 }
 0x320   : > { %p3763_p7 = pneg %p3762_p11 }
 0x322   : > { %p3768_p2 = pnand %p3767_p0, %p3763_p7 }
 0x324   : > { %3771 = shalt.err (!%p3768_p2)
}
 0x325   : > { %s3871_s29 = smov 128   ;;  %s3872_s17 = smov 8   ;;  %v3047_v31 = vld [vmem:[#allocation10 + $0x1] ss:$0 sm:$0xff]  ;;  %v2596_v32 = vld [vmem:[%s4116_s12 + $0x10] sm:$0xff]  ;;  %v2594_v35 = vld [vmem:[%s4116_s12] sm:$0xff] }
 0x326   : > { %3352 = dma.vmem_to_hbm [thread:$0]  (%p4011_p1), %s4774_s4, 512, %s4782_s20, %s2615_s23, %s3871_s29, %s3871_s29, %s3872_s17   ;;  %v3046_v34 = vld [vmem:[#allocation10] ss:$0 sm:$0xff]  ;;  %v2604_v36 = vmul.f32 %v3047_v31, %v2596_v32  ;;  %v2602_v43 = vmul.f32 %v3047_v31, %v2594_v35 }
 0x327   : > { %v2597_v39 = vld [vmem:[%s4116_s12 + $0x18] sm:$0xff]  ;;  %v2595_v46 = vld [vmem:[%s4116_s12 + $0x8] sm:$0xff]  ;;  %s403_s21 = scalar_lea.vmem [#allocation12], %s4113_s9  ;;  %s4822_s20 = scalar_lea.hbm %s4873_s7, %s3057_s22 }
 0x328   : > { %v2605_v59 = vmul.f32 %v3047_v31, %v2597_v39  ;;  %s2649_s4 = sshll.u32 %s403_s21, 4  ;;  %v2603_v1 = vmul.f32 %v3047_v31, %v2595_v46  ;;  %s2620_s23 = scalar_lea.sflag [#allocation13], %s4101_s14  ;;  %s4815_s4 = int_to_ptr.vmem [resolvable:$true] %s2649_s4 }
 0x329   : > { %s3772_s19 = scalar_lea.vmem %s4815_s4, 512  ;;  %s3873_s5 = smov [#allocation12]  }
 0x32a   : > { %p3773_p6 = scmp.ne.s32.totalorder %s4815_s4, %s3772_s19  ;;  %s3776_s11 = sshll.u32 %s3873_s5, 4  ;;  %s3777_s11 = int_to_ptr.vmem [resolvable:$false] %s3776_s11 }
 0x32b   : > { %s3778_s16 = scalar_lea.vmem %s3777_s11, 1024  ;;  %p3779_p3 = scmp.lt.s32.totalorder %s4815_s4, %s3777_s11 }
 0x32c   : > { %p3774_p9 = pnand %p3773_p6, %p4011_p1  ;;  %p3780_p5 = scmp.lt.s32.totalorder %s3778_s16, %s3772_s19 }
 0x32e   : > { %p3775_p8 = pneg %p3774_p9  ;;  %p3781_p4 = por %p3780_p5, %p3779_p3 }
 0x330   : > { %p3782_p12 = pnand %p3781_p4, %p3775_p8 }
 0x3d9   : > { %v3331_v38 = vpop.f32.mrf.mxu0 }
 0x3da   : > { %v2591_v40 = vadd.f32 %v3331_v38, %v3046_v34 }
 0x3db   : > { %v2569_v45 = vpop.f32.mrf.mxu0 }
 0x3dc   : > { %v2608_v47 = vadd.f32 %v2604_v36, %v2591_v40  ;;  %v2589_v48 = vadd.f32 %v3046_v34, %v2569_v45 }
 0x3dd   : > { %v3332_v62 = vpop.f32.mrf.mxu0 }
 0x3de   : > { %2612 = vst [vmem:[%s403_s21 + $0x10] sm:$0xff] %v2608_v47  ;;  %v2606_v42 = vadd.f32 %v2602_v43, %v2589_v48  ;;  %v2592_v0 = vadd.f32 %v3332_v62, %v3046_v34 }
 0x3df   : > { %v2572_v63 = vpop.f32.mrf.mxu0 }
 0x3e0   : > { %2610 = vst [vmem:[%s403_s21] sm:$0xff] %v2606_v42  ;;  %v2609_v5 = vadd.f32 %v2605_v59, %v2592_v0  ;;  %v2590_v10 = vadd.f32 %v3046_v34, %v2572_v63 }
 0x3e2   : > { %2613 = vst [vmem:[%s403_s21 + $0x18] sm:$0xff] %v2609_v5  ;;  %v2607_v14 = vadd.f32 %v2603_v1, %v2590_v10 }
 0x3e4   : > { %2611 = vst [vmem:[%s403_s21 + $0x8] sm:$0xff] %v2607_v14 }
 0x3e5   : > { %3785 = shalt.err (!%p3782_p12)
}
 0x3e6   : > { %s3786_s28 = scalar_lea.hbm %s4822_s20, 512  ;;  %s3790_s30 = scalar_lea.hbm %s4873_s7, 1024 }
 0x3e7   : > { %p3787_p11 = scmp.ne.s32.totalorder %s4822_s20, %s3786_s28  ;;  %p3791_p13 = scmp.lt.s32.totalorder %s4822_s20, %s4873_s7 }
 0x3e8   : > { %p3792_p0 = scmp.lt.s32.totalorder %s3790_s30, %s3786_s28 }
 0x3e9   : > { %p3788_p7 = pnand %p3787_p11, %p4011_p1 }
 0x3ea   : > { %p3793_p2 = por %p3792_p0, %p3791_p13 }
 0x3eb   : > { %p3789_p10 = pneg %p3788_p7 }
 0x3ed   : > { %p3794_p6 = pnand %p3793_p2, %p3789_p10 }
 0x3ef   : > { %3797 = shalt.err (!%p3794_p6)
}
 0x3f0   : > { %3353 = dma.vmem_to_hbm [thread:$0]  (%p4011_p1), %s4815_s4, 512, %s4822_s20, %s2620_s23, %s3871_s29, %s3871_s29, %s3872_s17  }
 0x3f1 PF: > { %s2664_s3 = sand.u32 1, %s3840_s24   ;;  %p4951_p9 = scmp.ne.s32.totalorder %s4887_s8, 0 }
 0x3f2   : > { %p4952_p8 = scmp.ge.s32.totalorder %s3852_s27, 2  ;;  %s2665_s0 = scalar_lea.sflag [#allocation4], %s2664_s3 }
 0x3f4   : > { %p3374_p3 = pnand %p4952_p8, %p4951_p9 }
 0x3f6   : > { %p3375_p5 = pneg %p3374_p3 }
 0x3f8   : > { %3831 = dma.done.wait (%p3375_p5), %s2665_s0, 512  }
 0x3f9   : > { %3833 = vsyncadd (%p3375_p5), %s2665_s0, 4294966784  ;;  %s2674_s21 = scalar_lea.sflag [#allocation13], %s2664_s3 }
 0x3fa   : > { %3835 = dma.done.wait (%p3375_p5), %s2674_s21, 512  }
 0x3fb   : > { %3837 = vsyncadd (%p3375_p5), %s2674_s21, 4294966784  ;;  %s4953_s18 = sld [smem:[#allocation20_spill]]  ;;  %p28_p1 = scmp.ge.s32.totalorder %s3997_s13, 4  }
 0x3fc   : > { %s4954_s24 = smov %s3844_s25  ;;  %s4955_s25 = smov %s3848_s26 }
 0x3fd   : > { %s4957_s27 = smov %s3997_s13  ;;  %30 = sbr.rel (!%p28_p1) target bundleno = 15 (0xf), region = 135 }
 0x401   : > { %s4956_s26 = smov %s4953_s18 }
 0x402   :  { %2679 = vsyncpa [#allocation3], 1 }
 0x403   :  { %2681 = vsyncpa [#allocation3 + $0x1], 1 }
 0x404   :  { %2682 = vsyncpa [#allocation6], 1 }
 0x405   :  { %2684 = vsyncpa [#allocation6 + $0x1], 1 }
 0x406   :  { %2685 = vsyncpa [#allocation9], 1 }
 0x407   :  { %2686 = vsyncpa [#allocation4], 1 }
 0x408   :  { %2688 = vsyncpa [#allocation4 + $0x1], 1 }
 0x409   :  { %2689 = vsyncpa [#allocation13], 1 }
 0x40a   :  { %2691 = vsyncpa [#allocation13 + $0x1], 1 }

</bundles_post_ra>
